<compile_context>
chip_gen: v6e
topology: v6e:2x2x1
jax: 0.10.0
libtpu: 0.0.40
codegen_flags: <defaults>
</compile_context>

<pallas_src>
import functools
import math

import jax
import jax.numpy as jnp
from jax.experimental import pallas as pl
from jax.experimental.pallas import tpu as pltpu

# ----------------------------- config ---------------------------------------
VOCAB = 64
B = 2          # batch
S = 8          # sequence length
H = 32         # hidden size
NH = 2         # attention heads
DH = H // NH   # head dim
FF = 64        # FFN intermediate
LAYERS = 2
PAD_ID = 1     # inputs.ne(1) -> pad token id is 1
LN_EPS = 1e-5
NEG_INF = -1e9


# --------------------------- fused encoder kernel ----------------------------
def _layernorm(x, g, b):
    mu = jnp.mean(x, axis=-1, keepdims=True)
    var = jnp.mean((x - mu) ** 2, axis=-1, keepdims=True)
    return (x - mu) * jax.lax.rsqrt(var + LN_EPS) * g + b


def _encoder_kernel(h0_ref, bias_ref, eg_ref, eb_ref,
                    wqkv_ref, bqkv_ref, wo_ref, bo_ref,
                    ln1g_ref, ln1b_ref, w1_ref, b1_ref,
                    w2_ref, b2_ref, ln2g_ref, ln2b_ref,
                    pw_ref, pb_ref,
                    seq_ref, pooled_ref):
    """Whole encoder forward in one invocation; everything resident in VMEM."""
    scale = 1.0 / math.sqrt(DH)
    bias = bias_ref[...]                                        # [B, 1, S]

    # embedding layernorm
    h = _layernorm(h0_ref[...], eg_ref[...], eb_ref[...])       # [B*S, H]

    for li in range(LAYERS):                                    # unrolled (LAYERS=2)
        # --- fused Q/K/V projection: one [B*S, H] x [H, 3H] MXU op ---------
        qkv = (jnp.dot(h, wqkv_ref[li], preferred_element_type=jnp.float32)
               + bqkv_ref[li])                                  # [B*S, 3H]

        # --- multi-head attention (heads unrolled, batch handled by einsum) -
        ctx_heads = []
        for hd in range(NH):                                    # unrolled (NH=2)
            lo = hd * DH
            qh = qkv[:, lo:lo + DH].reshape(B, S, DH)
            kh = qkv[:, H + lo:H + lo + DH].reshape(B, S, DH)
            vh = qkv[:, 2 * H + lo:2 * H + lo + DH].reshape(B, S, DH)
            s = jnp.einsum("bqd,bkd->bqk", qh, kh,
                           preferred_element_type=jnp.float32) * scale
            s = s + bias                                        # key mask
            m = jnp.max(s, axis=-1, keepdims=True)
            p = jnp.exp(s - m)
            p = p * pl.reciprocal(jnp.sum(p, axis=-1, keepdims=True),
                                  approx=False)
            ctx = jnp.einsum("bqk,bkd->bqd", p, vh,
                             preferred_element_type=jnp.float32)  # [B, S, DH]
            ctx_heads.append(ctx.reshape(B * S, DH))
        ctx = jnp.concatenate(ctx_heads, axis=-1)               # [B*S, H]

        # --- output projection + residual + LN ------------------------------
        attn_out = (jnp.dot(ctx, wo_ref[li], preferred_element_type=jnp.float32)
                    + bo_ref[li])
        h = _layernorm(h + attn_out, ln1g_ref[li], ln1b_ref[li])

        # --- FFN + residual + LN --------------------------------------------
        ff = (jnp.dot(h, w1_ref[li], preferred_element_type=jnp.float32)
              + b1_ref[li])
        # TODO(synk): HF BERT default is exact erf-GELU; tanh approximation is
        # used here because it lowers cleanly on the TPU vector unit.
        ff = jax.nn.gelu(ff, approximate=True)
        ff = (jnp.dot(ff, w2_ref[li], preferred_element_type=jnp.float32)
              + b2_ref[li])
        h = _layernorm(h + ff, ln2g_ref[li], ln2b_ref[li])

    seq_ref[...] = h.astype(seq_ref.dtype)                      # [B*S, H]

    # pooler: tanh(dense(hidden of first token)) == encoder(...)[1]
    first = h.reshape(B, S, H)[:, 0, :]                         # [B, H]
    pooled = jnp.tanh(jnp.dot(first, pw_ref[...],
                              preferred_element_type=jnp.float32) + pb_ref[...])
    pooled_ref[...] = pooled.astype(pooled_ref.dtype)


def encoder_pallas(h0, bias, params):
    """h0: [B*S, H] embeddings (pre-LN); bias: [B, 1, S] additive key mask."""
    inputs = (h0, bias,
              params["emb_ln_g"], params["emb_ln_b"],
              params["wqkv"], params["bqkv"], params["wo"], params["bo"],
              params["ln1_g"], params["ln1_b"], params["w1"], params["b1"],
              params["w2"], params["b2"], params["ln2_g"], params["ln2_b"],
              params["pool_w"], params["pool_b"])
    vmem = lambda: pl.BlockSpec(memory_space=pltpu.MemorySpace.VMEM)
    seq, pooled = pl.pallas_call(
        _encoder_kernel,
        out_shape=(jax.ShapeDtypeStruct((B * S, H), jnp.float32),
                   jax.ShapeDtypeStruct((B, H), jnp.float32)),
        in_specs=[vmem() for _ in inputs],
        out_specs=(vmem(), vmem()),
    )(*inputs)
    return seq, pooled


# ------------------------- encoder (glue + kernel) ---------------------------
def init_params(key):
    def nrm(k, shape):
        return 0.02 * jax.random.normal(k, shape, dtype=jnp.float32)

    keys = jax.random.split(key, 5)
    lkeys = jax.random.split(keys[4], LAYERS)
    wqkv, wo, w1, w2 = [], [], [], []
    for li in range(LAYERS):
        lk = jax.random.split(lkeys[li], 6)
        wq, wk, wv = nrm(lk[0], (H, H)), nrm(lk[1], (H, H)), nrm(lk[2], (H, H))
        wqkv.append(jnp.concatenate([wq, wk, wv], axis=1))      # fused [H, 3H]
        wo.append(nrm(lk[3], (H, H)))
        w1.append(nrm(lk[4], (H, FF)))
        w2.append(nrm(lk[5], (FF, H)))

    params = {
        "word_emb": nrm(keys[0], (VOCAB, H)),
        "pos_emb": nrm(keys[1], (S, H)),
        "emb_ln_g": jnp.ones((1, H), jnp.float32),
        "emb_ln_b": jnp.zeros((1, H), jnp.float32),
        "pool_w": nrm(keys[2], (H, H)),
        "pool_b": jnp.zeros((1, H), jnp.float32),
        # per-layer params stacked along a leading LAYERS axis
        "wqkv": jnp.stack(wqkv),                                # [L, H, 3H]
        "bqkv": jnp.zeros((LAYERS, 1, 3 * H), jnp.float32),
        "wo": jnp.stack(wo),                                    # [L, H, H]
        "bo": jnp.zeros((LAYERS, 1, H), jnp.float32),
        "ln1_g": jnp.ones((LAYERS, 1, H), jnp.float32),
        "ln1_b": jnp.zeros((LAYERS, 1, H), jnp.float32),
        "w1": jnp.stack(w1),                                    # [L, H, FF]
        "b1": jnp.zeros((LAYERS, 1, FF), jnp.float32),
        "w2": jnp.stack(w2),                                    # [L, FF, H]
        "b2": jnp.zeros((LAYERS, 1, H), jnp.float32),
        "ln2_g": jnp.ones((LAYERS, 1, H), jnp.float32),
        "ln2_b": jnp.zeros((LAYERS, 1, H), jnp.float32),
    }
    return params


@jax.jit
def encoder_forward(params, input_ids):
    """Returns (sequence_output [B,S,H], pooled_output [B,H]) like HF BERT."""
    attention_mask = (input_ids != PAD_ID)                      # inputs.ne(1)

    # embeddings (gather is glue, fused with mask construction under jit)
    h0 = params["word_emb"][input_ids] + params["pos_emb"][jnp.arange(S)][None]
    h0 = h0.reshape(B * S, H).astype(jnp.float32)

    # additive key mask bias [B, 1, S]
    bias = jnp.where(attention_mask, 0.0, NEG_INF).astype(jnp.float32)[:, None, :]

    seq, pooled = encoder_pallas(h0, bias, params)
    return seq.reshape(B, S, H), pooled


def model_forward(params, code_inputs=None, nl_inputs=None):
    """Mirrors Model.forward: returns encoder(inputs, mask=inputs.ne(1))[1]."""
    if code_inputs is not None:
        return encoder_forward(params, code_inputs)[1]
    else:
        return encoder_forward(params, nl_inputs)[1]


# --------------------------------- main --------------------------------------
if __name__ == "__main__":
    key = jax.random.PRNGKey(0)
    pkey, dkey1, dkey2 = jax.random.split(key, 3)
    params = init_params(pkey)

    # deterministic example token ids; trailing tokens are PAD (id=1) so the
    # attention mask (ids != 1) is actually exercised.
    code_ids = jax.random.randint(dkey1, (B, S), 2, VOCAB, dtype=jnp.int32)
    code_ids = code_ids.at[:, -2:].set(PAD_ID)
    nl_ids = jax.random.randint(dkey2, (B, S), 2, VOCAB, dtype=jnp.int32)
    nl_ids = nl_ids.at[:, -1:].set(PAD_ID)

    code_vec = model_forward(params, code_inputs=code_ids)      # [B, H]
    nl_vec = model_forward(params, nl_inputs=nl_ids)            # [B, H]

    jax.block_until_ready(code_vec)
    jax.block_until_ready(nl_vec)

    assert code_vec.shape == (B, H) and nl_vec.shape == (B, H)
    assert bool(jnp.all(jnp.isfinite(code_vec))) and bool(jnp.all(jnp.isfinite(nl_vec)))
    print("KERNEL_OK")
</pallas_src>

<mosaic_0001>
module attributes {stable_mosaic.version = 11 : i64} {
  func.func @_encoder_kernel(%arg0: memref<16x32xf32, #tpu.memory_space<vmem>>, %arg1: memref<2x1x8xf32, #tpu.memory_space<vmem>>, %arg2: memref<1x32xf32, #tpu.memory_space<vmem>>, %arg3: memref<1x32xf32, #tpu.memory_space<vmem>>, %arg4: memref<2x32x96xf32, #tpu.memory_space<vmem>>, %arg5: memref<2x1x96xf32, #tpu.memory_space<vmem>>, %arg6: memref<2x32x32xf32, #tpu.memory_space<vmem>>, %arg7: memref<2x1x32xf32, #tpu.memory_space<vmem>>, %arg8: memref<2x1x32xf32, #tpu.memory_space<vmem>>, %arg9: memref<2x1x32xf32, #tpu.memory_space<vmem>>, %arg10: memref<2x32x64xf32, #tpu.memory_space<vmem>>, %arg11: memref<2x1x64xf32, #tpu.memory_space<vmem>>, %arg12: memref<2x64x32xf32, #tpu.memory_space<vmem>>, %arg13: memref<2x1x32xf32, #tpu.memory_space<vmem>>, %arg14: memref<2x1x32xf32, #tpu.memory_space<vmem>>, %arg15: memref<2x1x32xf32, #tpu.memory_space<vmem>>, %arg16: memref<32x32xf32, #tpu.memory_space<vmem>>, %arg17: memref<1x32xf32, #tpu.memory_space<vmem>>, %arg18: memref<16x32xf32, #tpu.memory_space<vmem>>, %arg19: memref<2x32xf32, #tpu.memory_space<vmem>>) attributes {dimension_semantics = [], scalar_prefetch = 0 : i64, scratch_operands = 0 : i64, tpu.core_type = #tpu.core_type<tc>} {
    %c0 = arith.constant 0 : index
    %c0_0 = arith.constant 0 : index
    %c0_1 = arith.constant 0 : index
    %0 = vector.load %arg1[%c0, %c0_0, %c0_1] : memref<2x1x8xf32, #tpu.memory_space<vmem>>, vector<2x1x8xf32>
    %c0_2 = arith.constant 0 : index
    %c0_3 = arith.constant 0 : index
    %1 = vector.load %arg0[%c0_2, %c0_3] : memref<16x32xf32, #tpu.memory_space<vmem>>, vector<16x32xf32>
    %c0_4 = arith.constant 0 : index
    %c0_5 = arith.constant 0 : index
    %2 = vector.load %arg2[%c0_4, %c0_5] : memref<1x32xf32, #tpu.memory_space<vmem>>, vector<1x32xf32>
    %c0_6 = arith.constant 0 : index
    %c0_7 = arith.constant 0 : index
    %3 = vector.load %arg3[%c0_6, %c0_7] : memref<1x32xf32, #tpu.memory_space<vmem>>, vector<1x32xf32>
    %cst = arith.constant dense<0.000000e+00> : vector<16xf32>
    %4 = vector.multi_reduction <add>, %1, %cst [1] : vector<16x32xf32> to vector<16xf32>
    %5 = vector.shape_cast %4 : vector<16xf32> to vector<16x1xf32>
    %cst_8 = arith.constant 3.200000e+01 : f32
    %6 = vector.broadcast %cst_8 : f32 to vector<16x1xf32>
    %7 = arith.divf %5, %6 : vector<16x1xf32>
    %8 = vector.broadcast %7 : vector<16x1xf32> to vector<16x32xf32>
    %9 = arith.subf %1, %8 : vector<16x32xf32>
    %10 = arith.mulf %9, %9 : vector<16x32xf32>
    %cst_9 = arith.constant dense<0.000000e+00> : vector<16xf32>
    %11 = vector.multi_reduction <add>, %10, %cst_9 [1] : vector<16x32xf32> to vector<16xf32>
    %12 = vector.shape_cast %11 : vector<16xf32> to vector<16x1xf32>
    %cst_10 = arith.constant 3.200000e+01 : f32
    %13 = vector.broadcast %cst_10 : f32 to vector<16x1xf32>
    %14 = arith.divf %12, %13 : vector<16x1xf32>
    %15 = vector.broadcast %7 : vector<16x1xf32> to vector<16x32xf32>
    %16 = arith.subf %1, %15 : vector<16x32xf32>
    %cst_11 = arith.constant 9.99999974E-6 : f32
    %17 = vector.broadcast %cst_11 : f32 to vector<16x1xf32>
    %18 = arith.addf %14, %17 : vector<16x1xf32>
    %19 = math.rsqrt %18 : vector<16x1xf32>
    %20 = vector.broadcast %19 : vector<16x1xf32> to vector<16x32xf32>
    %21 = arith.mulf %16, %20 : vector<16x32xf32>
    %22 = vector.broadcast %2 : vector<1x32xf32> to vector<16x32xf32>
    %23 = arith.mulf %21, %22 : vector<16x32xf32>
    %24 = vector.broadcast %3 : vector<1x32xf32> to vector<16x32xf32>
    %25 = arith.addf %23, %24 : vector<16x32xf32>
    %c0_12 = arith.constant 0 : index
    %c0_13 = arith.constant 0 : index
    %c0_14 = arith.constant 0 : index
    %26 = vector.load %arg4[%c0_12, %c0_13, %c0_14] : memref<2x32x96xf32, #tpu.memory_space<vmem>>, vector<1x32x96xf32>
    %27 = vector.shape_cast %26 : vector<1x32x96xf32> to vector<32x96xf32>
    %cst_15 = arith.constant dense<0.000000e+00> : vector<16x96xf32>
    %28 = tpu.matmul %25, %27, %cst_15 {dimension_numbers = #tpu.dot_dimension_numbers<[1], [0], [0], [1], [0, 0, 1, 1], [], []>} : vector<16x32xf32>, vector<32x96xf32>, vector<16x96xf32> -> vector<16x96xf32>
    %c0_16 = arith.constant 0 : index
    %c0_17 = arith.constant 0 : index
    %c0_18 = arith.constant 0 : index
    %29 = vector.load %arg5[%c0_16, %c0_17, %c0_18] : memref<2x1x96xf32, #tpu.memory_space<vmem>>, vector<1x1x96xf32>
    %30 = vector.shape_cast %29 : vector<1x1x96xf32> to vector<1x96xf32>
    %31 = vector.broadcast %30 : vector<1x96xf32> to vector<16x96xf32>
    %32 = arith.addf %28, %31 : vector<16x96xf32>
    %33 = vector.extract_strided_slice %32 {offsets = [0, 0], sizes = [16, 16], strides = [1, 1]} : vector<16x96xf32> to vector<16x16xf32>
    %34 = vector.shape_cast %33 : vector<16x16xf32> to vector<2x8x16xf32>
    %35 = vector.extract_strided_slice %32 {offsets = [0, 32], sizes = [16, 16], strides = [1, 1]} : vector<16x96xf32> to vector<16x16xf32>
    %36 = vector.shape_cast %35 : vector<16x16xf32> to vector<2x8x16xf32>
    %37 = vector.extract_strided_slice %32 {offsets = [0, 64], sizes = [16, 16], strides = [1, 1]} : vector<16x96xf32> to vector<16x16xf32>
    %38 = vector.shape_cast %37 : vector<16x16xf32> to vector<2x8x16xf32>
    "tpu.trace_start"() <{level = 10 : i32, message = "bqd,bkd->bqk"}> : () -> ()
    %cst_19 = arith.constant dense<0.000000e+00> : vector<2x8x8xf32>
    %39 = tpu.matmul %34, %36, %cst_19 {dimension_numbers = #tpu.dot_dimension_numbers<[2], [2], [1], [1], [0, 0, 0, 1, 1, 1], [0], [0]>} : vector<2x8x16xf32>, vector<2x8x16xf32>, vector<2x8x8xf32> -> vector<2x8x8xf32>
    "tpu.trace_stop"() : () -> ()
    %cst_20 = arith.constant 2.500000e-01 : f32
    %40 = vector.broadcast %cst_20 : f32 to vector<2x8x8xf32>
    %41 = arith.mulf %39, %40 : vector<2x8x8xf32>
    %42 = vector.broadcast %0 : vector<2x1x8xf32> to vector<2x8x8xf32>
    %43 = arith.addf %41, %42 : vector<2x8x8xf32>
    %cst_21 = arith.constant dense<0xFF800000> : vector<2x8xf32>
    %44 = vector.multi_reduction <maximumf>, %43, %cst_21 [2] : vector<2x8x8xf32> to vector<2x8xf32>
    %45 = vector.shape_cast %44 : vector<2x8xf32> to vector<2x8x1xf32>
    %46 = vector.broadcast %45 : vector<2x8x1xf32> to vector<2x8x8xf32>
    %47 = arith.subf %43, %46 : vector<2x8x8xf32>
    %48 = math.exp %47 : vector<2x8x8xf32>
    %cst_22 = arith.constant dense<0.000000e+00> : vector<2x8xf32>
    %49 = vector.multi_reduction <add>, %48, %cst_22 [2] : vector<2x8x8xf32> to vector<2x8xf32>
    %50 = vector.shape_cast %49 : vector<2x8xf32> to vector<2x8x1xf32>
    %51 = tpu.reciprocal %50 : vector<2x8x1xf32> -> vector<2x8x1xf32>
    %52 = vector.broadcast %51 : vector<2x8x1xf32> to vector<2x8x8xf32>
    %53 = arith.mulf %48, %52 : vector<2x8x8xf32>
    "tpu.trace_start"() <{level = 10 : i32, message = "bqk,bkd->bqd"}> : () -> ()
    %cst_23 = arith.constant dense<0.000000e+00> : vector<2x8x16xf32>
    %54 = tpu.matmul %53, %38, %cst_23 {dimension_numbers = #tpu.dot_dimension_numbers<[2], [1], [1], [2], [0, 0, 0, 1, 1, 2], [0], [0]>} : vector<2x8x8xf32>, vector<2x8x16xf32>, vector<2x8x16xf32> -> vector<2x8x16xf32>
    "tpu.trace_stop"() : () -> ()
    %55 = vector.shape_cast %54 : vector<2x8x16xf32> to vector<16x16xf32>
    %56 = vector.extract_strided_slice %32 {offsets = [0, 16], sizes = [16, 16], strides = [1, 1]} : vector<16x96xf32> to vector<16x16xf32>
    %57 = vector.shape_cast %56 : vector<16x16xf32> to vector<2x8x16xf32>
    %58 = vector.extract_strided_slice %32 {offsets = [0, 48], sizes = [16, 16], strides = [1, 1]} : vector<16x96xf32> to vector<16x16xf32>
    %59 = vector.shape_cast %58 : vector<16x16xf32> to vector<2x8x16xf32>
    %60 = vector.extract_strided_slice %32 {offsets = [0, 80], sizes = [16, 16], strides = [1, 1]} : vector<16x96xf32> to vector<16x16xf32>
    %61 = vector.shape_cast %60 : vector<16x16xf32> to vector<2x8x16xf32>
    "tpu.trace_start"() <{level = 10 : i32, message = "bqd,bkd->bqk"}> : () -> ()
    %cst_24 = arith.constant dense<0.000000e+00> : vector<2x8x8xf32>
    %62 = tpu.matmul %57, %59, %cst_24 {dimension_numbers = #tpu.dot_dimension_numbers<[2], [2], [1], [1], [0, 0, 0, 1, 1, 1], [0], [0]>} : vector<2x8x16xf32>, vector<2x8x16xf32>, vector<2x8x8xf32> -> vector<2x8x8xf32>
    "tpu.trace_stop"() : () -> ()
    %cst_25 = arith.constant 2.500000e-01 : f32
    %63 = vector.broadcast %cst_25 : f32 to vector<2x8x8xf32>
    %64 = arith.mulf %62, %63 : vector<2x8x8xf32>
    %65 = vector.broadcast %0 : vector<2x1x8xf32> to vector<2x8x8xf32>
    %66 = arith.addf %64, %65 : vector<2x8x8xf32>
    %cst_26 = arith.constant dense<0xFF800000> : vector<2x8xf32>
    %67 = vector.multi_reduction <maximumf>, %66, %cst_26 [2] : vector<2x8x8xf32> to vector<2x8xf32>
    %68 = vector.shape_cast %67 : vector<2x8xf32> to vector<2x8x1xf32>
    %69 = vector.broadcast %68 : vector<2x8x1xf32> to vector<2x8x8xf32>
    %70 = arith.subf %66, %69 : vector<2x8x8xf32>
    %71 = math.exp %70 : vector<2x8x8xf32>
    %cst_27 = arith.constant dense<0.000000e+00> : vector<2x8xf32>
    %72 = vector.multi_reduction <add>, %71, %cst_27 [2] : vector<2x8x8xf32> to vector<2x8xf32>
    %73 = vector.shape_cast %72 : vector<2x8xf32> to vector<2x8x1xf32>
    %74 = tpu.reciprocal %73 : vector<2x8x1xf32> -> vector<2x8x1xf32>
    %75 = vector.broadcast %74 : vector<2x8x1xf32> to vector<2x8x8xf32>
    %76 = arith.mulf %71, %75 : vector<2x8x8xf32>
    "tpu.trace_start"() <{level = 10 : i32, message = "bqk,bkd->bqd"}> : () -> ()
    %cst_28 = arith.constant dense<0.000000e+00> : vector<2x8x16xf32>
    %77 = tpu.matmul %76, %61, %cst_28 {dimension_numbers = #tpu.dot_dimension_numbers<[2], [1], [1], [2], [0, 0, 0, 1, 1, 2], [0], [0]>} : vector<2x8x8xf32>, vector<2x8x16xf32>, vector<2x8x16xf32> -> vector<2x8x16xf32>
    "tpu.trace_stop"() : () -> ()
    %78 = vector.shape_cast %77 : vector<2x8x16xf32> to vector<16x16xf32>
    %79 = tpu.concatenate %55, %78 in 1 : vector<16x16xf32>, vector<16x16xf32> -> vector<16x32xf32>
    %c0_29 = arith.constant 0 : index
    %c0_30 = arith.constant 0 : index
    %c0_31 = arith.constant 0 : index
    %80 = vector.load %arg6[%c0_29, %c0_30, %c0_31] : memref<2x32x32xf32, #tpu.memory_space<vmem>>, vector<1x32x32xf32>
    %81 = vector.shape_cast %80 : vector<1x32x32xf32> to vector<32x32xf32>
    %cst_32 = arith.constant dense<0.000000e+00> : vector<16x32xf32>
    %82 = tpu.matmul %79, %81, %cst_32 {dimension_numbers = #tpu.dot_dimension_numbers<[1], [0], [0], [1], [0, 0, 1, 1], [], []>} : vector<16x32xf32>, vector<32x32xf32>, vector<16x32xf32> -> vector<16x32xf32>
    %c0_33 = arith.constant 0 : index
    %c0_34 = arith.constant 0 : index
    %c0_35 = arith.constant 0 : index
    %83 = vector.load %arg7[%c0_33, %c0_34, %c0_35] : memref<2x1x32xf32, #tpu.memory_space<vmem>>, vector<1x1x32xf32>
    %84 = vector.shape_cast %83 : vector<1x1x32xf32> to vector<1x32xf32>
    %85 = vector.broadcast %84 : vector<1x32xf32> to vector<16x32xf32>
    %86 = arith.addf %82, %85 : vector<16x32xf32>
    %87 = arith.addf %25, %86 : vector<16x32xf32>
    %c0_36 = arith.constant 0 : index
    %c0_37 = arith.constant 0 : index
    %c0_38 = arith.constant 0 : index
    %88 = vector.load %arg8[%c0_36, %c0_37, %c0_38] : memref<2x1x32xf32, #tpu.memory_space<vmem>>, vector<1x1x32xf32>
    %89 = vector.shape_cast %88 : vector<1x1x32xf32> to vector<1x32xf32>
    %c0_39 = arith.constant 0 : index
    %c0_40 = arith.constant 0 : index
    %c0_41 = arith.constant 0 : index
    %90 = vector.load %arg9[%c0_39, %c0_40, %c0_41] : memref<2x1x32xf32, #tpu.memory_space<vmem>>, vector<1x1x32xf32>
    %91 = vector.shape_cast %90 : vector<1x1x32xf32> to vector<1x32xf32>
    %cst_42 = arith.constant dense<0.000000e+00> : vector<16xf32>
    %92 = vector.multi_reduction <add>, %87, %cst_42 [1] : vector<16x32xf32> to vector<16xf32>
    %93 = vector.shape_cast %92 : vector<16xf32> to vector<16x1xf32>
    %cst_43 = arith.constant 3.200000e+01 : f32
    %94 = vector.broadcast %cst_43 : f32 to vector<16x1xf32>
    %95 = arith.divf %93, %94 : vector<16x1xf32>
    %96 = vector.broadcast %95 : vector<16x1xf32> to vector<16x32xf32>
    %97 = arith.subf %87, %96 : vector<16x32xf32>
    %98 = arith.mulf %97, %97 : vector<16x32xf32>
    %cst_44 = arith.constant dense<0.000000e+00> : vector<16xf32>
    %99 = vector.multi_reduction <add>, %98, %cst_44 [1] : vector<16x32xf32> to vector<16xf32>
    %100 = vector.shape_cast %99 : vector<16xf32> to vector<16x1xf32>
    %cst_45 = arith.constant 3.200000e+01 : f32
    %101 = vector.broadcast %cst_45 : f32 to vector<16x1xf32>
    %102 = arith.divf %100, %101 : vector<16x1xf32>
    %103 = vector.broadcast %95 : vector<16x1xf32> to vector<16x32xf32>
    %104 = arith.subf %87, %103 : vector<16x32xf32>
    %cst_46 = arith.constant 9.99999974E-6 : f32
    %105 = vector.broadcast %cst_46 : f32 to vector<16x1xf32>
    %106 = arith.addf %102, %105 : vector<16x1xf32>
    %107 = math.rsqrt %106 : vector<16x1xf32>
    %108 = vector.broadcast %107 : vector<16x1xf32> to vector<16x32xf32>
    %109 = arith.mulf %104, %108 : vector<16x32xf32>
    %110 = vector.broadcast %89 : vector<1x32xf32> to vector<16x32xf32>
    %111 = arith.mulf %109, %110 : vector<16x32xf32>
    %112 = vector.broadcast %91 : vector<1x32xf32> to vector<16x32xf32>
    %113 = arith.addf %111, %112 : vector<16x32xf32>
    %c0_47 = arith.constant 0 : index
    %c0_48 = arith.constant 0 : index
    %c0_49 = arith.constant 0 : index
    %114 = vector.load %arg10[%c0_47, %c0_48, %c0_49] : memref<2x32x64xf32, #tpu.memory_space<vmem>>, vector<1x32x64xf32>
    %115 = vector.shape_cast %114 : vector<1x32x64xf32> to vector<32x64xf32>
    %cst_50 = arith.constant dense<0.000000e+00> : vector<16x64xf32>
    %116 = tpu.matmul %113, %115, %cst_50 {dimension_numbers = #tpu.dot_dimension_numbers<[1], [0], [0], [1], [0, 0, 1, 1], [], []>} : vector<16x32xf32>, vector<32x64xf32>, vector<16x64xf32> -> vector<16x64xf32>
    %c0_51 = arith.constant 0 : index
    %c0_52 = arith.constant 0 : index
    %c0_53 = arith.constant 0 : index
    %117 = vector.load %arg11[%c0_51, %c0_52, %c0_53] : memref<2x1x64xf32, #tpu.memory_space<vmem>>, vector<1x1x64xf32>
    %118 = vector.shape_cast %117 : vector<1x1x64xf32> to vector<1x64xf32>
    %119 = vector.broadcast %118 : vector<1x64xf32> to vector<16x64xf32>
    %120 = arith.addf %116, %119 : vector<16x64xf32>
    %121 = arith.mulf %120, %120 : vector<16x64xf32>
    %122 = arith.mulf %120, %121 : vector<16x64xf32>
    %cst_54 = arith.constant 4.471500e-02 : f32
    %123 = vector.broadcast %cst_54 : f32 to vector<16x64xf32>
    %124 = arith.mulf %123, %122 : vector<16x64xf32>
    %125 = arith.addf %120, %124 : vector<16x64xf32>
    %cst_55 = arith.constant 0.797884583 : f32
    %126 = vector.broadcast %cst_55 : f32 to vector<16x64xf32>
    %127 = arith.mulf %126, %125 : vector<16x64xf32>
    %128 = math.tanh %127 : vector<16x64xf32>
    %cst_56 = arith.constant 1.000000e+00 : f32
    %129 = vector.broadcast %cst_56 : f32 to vector<16x64xf32>
    %130 = arith.addf %129, %128 : vector<16x64xf32>
    %cst_57 = arith.constant 5.000000e-01 : f32
    %131 = vector.broadcast %cst_57 : f32 to vector<16x64xf32>
    %132 = arith.mulf %131, %130 : vector<16x64xf32>
    %133 = arith.mulf %120, %132 : vector<16x64xf32>
    %c0_58 = arith.constant 0 : index
    %c0_59 = arith.constant 0 : index
    %c0_60 = arith.constant 0 : index
    %134 = vector.load %arg12[%c0_58, %c0_59, %c0_60] : memref<2x64x32xf32, #tpu.memory_space<vmem>>, vector<1x64x32xf32>
    %135 = vector.shape_cast %134 : vector<1x64x32xf32> to vector<64x32xf32>
    %cst_61 = arith.constant dense<0.000000e+00> : vector<16x32xf32>
    %136 = tpu.matmul %133, %135, %cst_61 {dimension_numbers = #tpu.dot_dimension_numbers<[1], [0], [0], [1], [0, 0, 1, 1], [], []>} : vector<16x64xf32>, vector<64x32xf32>, vector<16x32xf32> -> vector<16x32xf32>
    %c0_62 = arith.constant 0 : index
    %c0_63 = arith.constant 0 : index
    %c0_64 = arith.constant 0 : index
    %137 = vector.load %arg13[%c0_62, %c0_63, %c0_64] : memref<2x1x32xf32, #tpu.memory_space<vmem>>, vector<1x1x32xf32>
    %138 = vector.shape_cast %137 : vector<1x1x32xf32> to vector<1x32xf32>
    %139 = vector.broadcast %138 : vector<1x32xf32> to vector<16x32xf32>
    %140 = arith.addf %136, %139 : vector<16x32xf32>
    %141 = arith.addf %113, %140 : vector<16x32xf32>
    %c0_65 = arith.constant 0 : index
    %c0_66 = arith.constant 0 : index
    %c0_67 = arith.constant 0 : index
    %142 = vector.load %arg14[%c0_65, %c0_66, %c0_67] : memref<2x1x32xf32, #tpu.memory_space<vmem>>, vector<1x1x32xf32>
    %143 = vector.shape_cast %142 : vector<1x1x32xf32> to vector<1x32xf32>
    %c0_68 = arith.constant 0 : index
    %c0_69 = arith.constant 0 : index
    %c0_70 = arith.constant 0 : index
    %144 = vector.load %arg15[%c0_68, %c0_69, %c0_70] : memref<2x1x32xf32, #tpu.memory_space<vmem>>, vector<1x1x32xf32>
    %145 = vector.shape_cast %144 : vector<1x1x32xf32> to vector<1x32xf32>
    %cst_71 = arith.constant dense<0.000000e+00> : vector<16xf32>
    %146 = vector.multi_reduction <add>, %141, %cst_71 [1] : vector<16x32xf32> to vector<16xf32>
    %147 = vector.shape_cast %146 : vector<16xf32> to vector<16x1xf32>
    %cst_72 = arith.constant 3.200000e+01 : f32
    %148 = vector.broadcast %cst_72 : f32 to vector<16x1xf32>
    %149 = arith.divf %147, %148 : vector<16x1xf32>
    %150 = vector.broadcast %149 : vector<16x1xf32> to vector<16x32xf32>
    %151 = arith.subf %141, %150 : vector<16x32xf32>
    %152 = arith.mulf %151, %151 : vector<16x32xf32>
    %cst_73 = arith.constant dense<0.000000e+00> : vector<16xf32>
    %153 = vector.multi_reduction <add>, %152, %cst_73 [1] : vector<16x32xf32> to vector<16xf32>
    %154 = vector.shape_cast %153 : vector<16xf32> to vector<16x1xf32>
    %cst_74 = arith.constant 3.200000e+01 : f32
    %155 = vector.broadcast %cst_74 : f32 to vector<16x1xf32>
    %156 = arith.divf %154, %155 : vector<16x1xf32>
    %157 = vector.broadcast %149 : vector<16x1xf32> to vector<16x32xf32>
    %158 = arith.subf %141, %157 : vector<16x32xf32>
    %cst_75 = arith.constant 9.99999974E-6 : f32
    %159 = vector.broadcast %cst_75 : f32 to vector<16x1xf32>
    %160 = arith.addf %156, %159 : vector<16x1xf32>
    %161 = math.rsqrt %160 : vector<16x1xf32>
    %162 = vector.broadcast %161 : vector<16x1xf32> to vector<16x32xf32>
    %163 = arith.mulf %158, %162 : vector<16x32xf32>
    %164 = vector.broadcast %143 : vector<1x32xf32> to vector<16x32xf32>
    %165 = arith.mulf %163, %164 : vector<16x32xf32>
    %166 = vector.broadcast %145 : vector<1x32xf32> to vector<16x32xf32>
    %167 = arith.addf %165, %166 : vector<16x32xf32>
    %c1 = arith.constant 1 : index
    %c0_76 = arith.constant 0 : index
    %c0_77 = arith.constant 0 : index
    %168 = vector.load %arg4[%c1, %c0_76, %c0_77] : memref<2x32x96xf32, #tpu.memory_space<vmem>>, vector<1x32x96xf32>
    %169 = vector.shape_cast %168 : vector<1x32x96xf32> to vector<32x96xf32>
    %cst_78 = arith.constant dense<0.000000e+00> : vector<16x96xf32>
    %170 = tpu.matmul %167, %169, %cst_78 {dimension_numbers = #tpu.dot_dimension_numbers<[1], [0], [0], [1], [0, 0, 1, 1], [], []>} : vector<16x32xf32>, vector<32x96xf32>, vector<16x96xf32> -> vector<16x96xf32>
    %c1_79 = arith.constant 1 : index
    %c0_80 = arith.constant 0 : index
    %c0_81 = arith.constant 0 : index
    %171 = vector.load %arg5[%c1_79, %c0_80, %c0_81] : memref<2x1x96xf32, #tpu.memory_space<vmem>>, vector<1x1x96xf32>
    %172 = vector.shape_cast %171 : vector<1x1x96xf32> to vector<1x96xf32>
    %173 = vector.broadcast %172 : vector<1x96xf32> to vector<16x96xf32>
    %174 = arith.addf %170, %173 : vector<16x96xf32>
    %175 = vector.extract_strided_slice %174 {offsets = [0, 0], sizes = [16, 16], strides = [1, 1]} : vector<16x96xf32> to vector<16x16xf32>
    %176 = vector.shape_cast %175 : vector<16x16xf32> to vector<2x8x16xf32>
    %177 = vector.extract_strided_slice %174 {offsets = [0, 32], sizes = [16, 16], strides = [1, 1]} : vector<16x96xf32> to vector<16x16xf32>
    %178 = vector.shape_cast %177 : vector<16x16xf32> to vector<2x8x16xf32>
    %179 = vector.extract_strided_slice %174 {offsets = [0, 64], sizes = [16, 16], strides = [1, 1]} : vector<16x96xf32> to vector<16x16xf32>
    %180 = vector.shape_cast %179 : vector<16x16xf32> to vector<2x8x16xf32>
    "tpu.trace_start"() <{level = 10 : i32, message = "bqd,bkd->bqk"}> : () -> ()
    %cst_82 = arith.constant dense<0.000000e+00> : vector<2x8x8xf32>
    %181 = tpu.matmul %176, %178, %cst_82 {dimension_numbers = #tpu.dot_dimension_numbers<[2], [2], [1], [1], [0, 0, 0, 1, 1, 1], [0], [0]>} : vector<2x8x16xf32>, vector<2x8x16xf32>, vector<2x8x8xf32> -> vector<2x8x8xf32>
    "tpu.trace_stop"() : () -> ()
    %cst_83 = arith.constant 2.500000e-01 : f32
    %182 = vector.broadcast %cst_83 : f32 to vector<2x8x8xf32>
    %183 = arith.mulf %181, %182 : vector<2x8x8xf32>
    %184 = vector.broadcast %0 : vector<2x1x8xf32> to vector<2x8x8xf32>
    %185 = arith.addf %183, %184 : vector<2x8x8xf32>
    %cst_84 = arith.constant dense<0xFF800000> : vector<2x8xf32>
    %186 = vector.multi_reduction <maximumf>, %185, %cst_84 [2] : vector<2x8x8xf32> to vector<2x8xf32>
    %187 = vector.shape_cast %186 : vector<2x8xf32> to vector<2x8x1xf32>
    %188 = vector.broadcast %187 : vector<2x8x1xf32> to vector<2x8x8xf32>
    %189 = arith.subf %185, %188 : vector<2x8x8xf32>
    %190 = math.exp %189 : vector<2x8x8xf32>
    %cst_85 = arith.constant dense<0.000000e+00> : vector<2x8xf32>
    %191 = vector.multi_reduction <add>, %190, %cst_85 [2] : vector<2x8x8xf32> to vector<2x8xf32>
    %192 = vector.shape_cast %191 : vector<2x8xf32> to vector<2x8x1xf32>
    %193 = tpu.reciprocal %192 : vector<2x8x1xf32> -> vector<2x8x1xf32>
    %194 = vector.broadcast %193 : vector<2x8x1xf32> to vector<2x8x8xf32>
    %195 = arith.mulf %190, %194 : vector<2x8x8xf32>
    "tpu.trace_start"() <{level = 10 : i32, message = "bqk,bkd->bqd"}> : () -> ()
    %cst_86 = arith.constant dense<0.000000e+00> : vector<2x8x16xf32>
    %196 = tpu.matmul %195, %180, %cst_86 {dimension_numbers = #tpu.dot_dimension_numbers<[2], [1], [1], [2], [0, 0, 0, 1, 1, 2], [0], [0]>} : vector<2x8x8xf32>, vector<2x8x16xf32>, vector<2x8x16xf32> -> vector<2x8x16xf32>
    "tpu.trace_stop"() : () -> ()
    %197 = vector.shape_cast %196 : vector<2x8x16xf32> to vector<16x16xf32>
    %198 = vector.extract_strided_slice %174 {offsets = [0, 16], sizes = [16, 16], strides = [1, 1]} : vector<16x96xf32> to vector<16x16xf32>
    %199 = vector.shape_cast %198 : vector<16x16xf32> to vector<2x8x16xf32>
    %200 = vector.extract_strided_slice %174 {offsets = [0, 48], sizes = [16, 16], strides = [1, 1]} : vector<16x96xf32> to vector<16x16xf32>
    %201 = vector.shape_cast %200 : vector<16x16xf32> to vector<2x8x16xf32>
    %202 = vector.extract_strided_slice %174 {offsets = [0, 80], sizes = [16, 16], strides = [1, 1]} : vector<16x96xf32> to vector<16x16xf32>
    %203 = vector.shape_cast %202 : vector<16x16xf32> to vector<2x8x16xf32>
    "tpu.trace_start"() <{level = 10 : i32, message = "bqd,bkd->bqk"}> : () -> ()
    %cst_87 = arith.constant dense<0.000000e+00> : vector<2x8x8xf32>
    %204 = tpu.matmul %199, %201, %cst_87 {dimension_numbers = #tpu.dot_dimension_numbers<[2], [2], [1], [1], [0, 0, 0, 1, 1, 1], [0], [0]>} : vector<2x8x16xf32>, vector<2x8x16xf32>, vector<2x8x8xf32> -> vector<2x8x8xf32>
    "tpu.trace_stop"() : () -> ()
    %cst_88 = arith.constant 2.500000e-01 : f32
    %205 = vector.broadcast %cst_88 : f32 to vector<2x8x8xf32>
    %206 = arith.mulf %204, %205 : vector<2x8x8xf32>
    %207 = vector.broadcast %0 : vector<2x1x8xf32> to vector<2x8x8xf32>
    %208 = arith.addf %206, %207 : vector<2x8x8xf32>
    %cst_89 = arith.constant dense<0xFF800000> : vector<2x8xf32>
    %209 = vector.multi_reduction <maximumf>, %208, %cst_89 [2] : vector<2x8x8xf32> to vector<2x8xf32>
    %210 = vector.shape_cast %209 : vector<2x8xf32> to vector<2x8x1xf32>
    %211 = vector.broadcast %210 : vector<2x8x1xf32> to vector<2x8x8xf32>
    %212 = arith.subf %208, %211 : vector<2x8x8xf32>
    %213 = math.exp %212 : vector<2x8x8xf32>
    %cst_90 = arith.constant dense<0.000000e+00> : vector<2x8xf32>
    %214 = vector.multi_reduction <add>, %213, %cst_90 [2] : vector<2x8x8xf32> to vector<2x8xf32>
    %215 = vector.shape_cast %214 : vector<2x8xf32> to vector<2x8x1xf32>
    %216 = tpu.reciprocal %215 : vector<2x8x1xf32> -> vector<2x8x1xf32>
    %217 = vector.broadcast %216 : vector<2x8x1xf32> to vector<2x8x8xf32>
    %218 = arith.mulf %213, %217 : vector<2x8x8xf32>
    "tpu.trace_start"() <{level = 10 : i32, message = "bqk,bkd->bqd"}> : () -> ()
    %cst_91 = arith.constant dense<0.000000e+00> : vector<2x8x16xf32>
    %219 = tpu.matmul %218, %203, %cst_91 {dimension_numbers = #tpu.dot_dimension_numbers<[2], [1], [1], [2], [0, 0, 0, 1, 1, 2], [0], [0]>} : vector<2x8x8xf32>, vector<2x8x16xf32>, vector<2x8x16xf32> -> vector<2x8x16xf32>
    "tpu.trace_stop"() : () -> ()
    %220 = vector.shape_cast %219 : vector<2x8x16xf32> to vector<16x16xf32>
    %221 = tpu.concatenate %197, %220 in 1 : vector<16x16xf32>, vector<16x16xf32> -> vector<16x32xf32>
    %c1_92 = arith.constant 1 : index
    %c0_93 = arith.constant 0 : index
    %c0_94 = arith.constant 0 : index
    %222 = vector.load %arg6[%c1_92, %c0_93, %c0_94] : memref<2x32x32xf32, #tpu.memory_space<vmem>>, vector<1x32x32xf32>
    %223 = vector.shape_cast %222 : vector<1x32x32xf32> to vector<32x32xf32>
    %cst_95 = arith.constant dense<0.000000e+00> : vector<16x32xf32>
    %224 = tpu.matmul %221, %223, %cst_95 {dimension_numbers = #tpu.dot_dimension_numbers<[1], [0], [0], [1], [0, 0, 1, 1], [], []>} : vector<16x32xf32>, vector<32x32xf32>, vector<16x32xf32> -> vector<16x32xf32>
    %c1_96 = arith.constant 1 : index
    %c0_97 = arith.constant 0 : index
    %c0_98 = arith.constant 0 : index
    %225 = vector.load %arg7[%c1_96, %c0_97, %c0_98] : memref<2x1x32xf32, #tpu.memory_space<vmem>>, vector<1x1x32xf32>
    %226 = vector.shape_cast %225 : vector<1x1x32xf32> to vector<1x32xf32>
    %227 = vector.broadcast %226 : vector<1x32xf32> to vector<16x32xf32>
    %228 = arith.addf %224, %227 : vector<16x32xf32>
    %229 = arith.addf %167, %228 : vector<16x32xf32>
    %c1_99 = arith.constant 1 : index
    %c0_100 = arith.constant 0 : index
    %c0_101 = arith.constant 0 : index
    %230 = vector.load %arg8[%c1_99, %c0_100, %c0_101] : memref<2x1x32xf32, #tpu.memory_space<vmem>>, vector<1x1x32xf32>
    %231 = vector.shape_cast %230 : vector<1x1x32xf32> to vector<1x32xf32>
    %c1_102 = arith.constant 1 : index
    %c0_103 = arith.constant 0 : index
    %c0_104 = arith.constant 0 : index
    %232 = vector.load %arg9[%c1_102, %c0_103, %c0_104] : memref<2x1x32xf32, #tpu.memory_space<vmem>>, vector<1x1x32xf32>
    %233 = vector.shape_cast %232 : vector<1x1x32xf32> to vector<1x32xf32>
    %cst_105 = arith.constant dense<0.000000e+00> : vector<16xf32>
    %234 = vector.multi_reduction <add>, %229, %cst_105 [1] : vector<16x32xf32> to vector<16xf32>
    %235 = vector.shape_cast %234 : vector<16xf32> to vector<16x1xf32>
    %cst_106 = arith.constant 3.200000e+01 : f32
    %236 = vector.broadcast %cst_106 : f32 to vector<16x1xf32>
    %237 = arith.divf %235, %236 : vector<16x1xf32>
    %238 = vector.broadcast %237 : vector<16x1xf32> to vector<16x32xf32>
    %239 = arith.subf %229, %238 : vector<16x32xf32>
    %240 = arith.mulf %239, %239 : vector<16x32xf32>
    %cst_107 = arith.constant dense<0.000000e+00> : vector<16xf32>
    %241 = vector.multi_reduction <add>, %240, %cst_107 [1] : vector<16x32xf32> to vector<16xf32>
    %242 = vector.shape_cast %241 : vector<16xf32> to vector<16x1xf32>
    %cst_108 = arith.constant 3.200000e+01 : f32
    %243 = vector.broadcast %cst_108 : f32 to vector<16x1xf32>
    %244 = arith.divf %242, %243 : vector<16x1xf32>
    %245 = vector.broadcast %237 : vector<16x1xf32> to vector<16x32xf32>
    %246 = arith.subf %229, %245 : vector<16x32xf32>
    %cst_109 = arith.constant 9.99999974E-6 : f32
    %247 = vector.broadcast %cst_109 : f32 to vector<16x1xf32>
    %248 = arith.addf %244, %247 : vector<16x1xf32>
    %249 = math.rsqrt %248 : vector<16x1xf32>
    %250 = vector.broadcast %249 : vector<16x1xf32> to vector<16x32xf32>
    %251 = arith.mulf %246, %250 : vector<16x32xf32>
    %252 = vector.broadcast %231 : vector<1x32xf32> to vector<16x32xf32>
    %253 = arith.mulf %251, %252 : vector<16x32xf32>
    %254 = vector.broadcast %233 : vector<1x32xf32> to vector<16x32xf32>
    %255 = arith.addf %253, %254 : vector<16x32xf32>
    %c1_110 = arith.constant 1 : index
    %c0_111 = arith.constant 0 : index
    %c0_112 = arith.constant 0 : index
    %256 = vector.load %arg10[%c1_110, %c0_111, %c0_112] : memref<2x32x64xf32, #tpu.memory_space<vmem>>, vector<1x32x64xf32>
    %257 = vector.shape_cast %256 : vector<1x32x64xf32> to vector<32x64xf32>
    %cst_113 = arith.constant dense<0.000000e+00> : vector<16x64xf32>
    %258 = tpu.matmul %255, %257, %cst_113 {dimension_numbers = #tpu.dot_dimension_numbers<[1], [0], [0], [1], [0, 0, 1, 1], [], []>} : vector<16x32xf32>, vector<32x64xf32>, vector<16x64xf32> -> vector<16x64xf32>
    %c1_114 = arith.constant 1 : index
    %c0_115 = arith.constant 0 : index
    %c0_116 = arith.constant 0 : index
    %259 = vector.load %arg11[%c1_114, %c0_115, %c0_116] : memref<2x1x64xf32, #tpu.memory_space<vmem>>, vector<1x1x64xf32>
    %260 = vector.shape_cast %259 : vector<1x1x64xf32> to vector<1x64xf32>
    %261 = vector.broadcast %260 : vector<1x64xf32> to vector<16x64xf32>
    %262 = arith.addf %258, %261 : vector<16x64xf32>
    %263 = arith.mulf %262, %262 : vector<16x64xf32>
    %264 = arith.mulf %262, %263 : vector<16x64xf32>
    %cst_117 = arith.constant 4.471500e-02 : f32
    %265 = vector.broadcast %cst_117 : f32 to vector<16x64xf32>
    %266 = arith.mulf %265, %264 : vector<16x64xf32>
    %267 = arith.addf %262, %266 : vector<16x64xf32>
    %cst_118 = arith.constant 0.797884583 : f32
    %268 = vector.broadcast %cst_118 : f32 to vector<16x64xf32>
    %269 = arith.mulf %268, %267 : vector<16x64xf32>
    %270 = math.tanh %269 : vector<16x64xf32>
    %cst_119 = arith.constant 1.000000e+00 : f32
    %271 = vector.broadcast %cst_119 : f32 to vector<16x64xf32>
    %272 = arith.addf %271, %270 : vector<16x64xf32>
    %cst_120 = arith.constant 5.000000e-01 : f32
    %273 = vector.broadcast %cst_120 : f32 to vector<16x64xf32>
    %274 = arith.mulf %273, %272 : vector<16x64xf32>
    %275 = arith.mulf %262, %274 : vector<16x64xf32>
    %c1_121 = arith.constant 1 : index
    %c0_122 = arith.constant 0 : index
    %c0_123 = arith.constant 0 : index
    %276 = vector.load %arg12[%c1_121, %c0_122, %c0_123] : memref<2x64x32xf32, #tpu.memory_space<vmem>>, vector<1x64x32xf32>
    %277 = vector.shape_cast %276 : vector<1x64x32xf32> to vector<64x32xf32>
    %cst_124 = arith.constant dense<0.000000e+00> : vector<16x32xf32>
    %278 = tpu.matmul %275, %277, %cst_124 {dimension_numbers = #tpu.dot_dimension_numbers<[1], [0], [0], [1], [0, 0, 1, 1], [], []>} : vector<16x64xf32>, vector<64x32xf32>, vector<16x32xf32> -> vector<16x32xf32>
    %c1_125 = arith.constant 1 : index
    %c0_126 = arith.constant 0 : index
    %c0_127 = arith.constant 0 : index
    %279 = vector.load %arg13[%c1_125, %c0_126, %c0_127] : memref<2x1x32xf32, #tpu.memory_space<vmem>>, vector<1x1x32xf32>
    %280 = vector.shape_cast %279 : vector<1x1x32xf32> to vector<1x32xf32>
    %281 = vector.broadcast %280 : vector<1x32xf32> to vector<16x32xf32>
    %282 = arith.addf %278, %281 : vector<16x32xf32>
    %283 = arith.addf %255, %282 : vector<16x32xf32>
    %c1_128 = arith.constant 1 : index
    %c0_129 = arith.constant 0 : index
    %c0_130 = arith.constant 0 : index
    %284 = vector.load %arg14[%c1_128, %c0_129, %c0_130] : memref<2x1x32xf32, #tpu.memory_space<vmem>>, vector<1x1x32xf32>
    %285 = vector.shape_cast %284 : vector<1x1x32xf32> to vector<1x32xf32>
    %c1_131 = arith.constant 1 : index
    %c0_132 = arith.constant 0 : index
    %c0_133 = arith.constant 0 : index
    %286 = vector.load %arg15[%c1_131, %c0_132, %c0_133] : memref<2x1x32xf32, #tpu.memory_space<vmem>>, vector<1x1x32xf32>
    %287 = vector.shape_cast %286 : vector<1x1x32xf32> to vector<1x32xf32>
    %cst_134 = arith.constant dense<0.000000e+00> : vector<16xf32>
    %288 = vector.multi_reduction <add>, %283, %cst_134 [1] : vector<16x32xf32> to vector<16xf32>
    %289 = vector.shape_cast %288 : vector<16xf32> to vector<16x1xf32>
    %cst_135 = arith.constant 3.200000e+01 : f32
    %290 = vector.broadcast %cst_135 : f32 to vector<16x1xf32>
    %291 = arith.divf %289, %290 : vector<16x1xf32>
    %292 = vector.broadcast %291 : vector<16x1xf32> to vector<16x32xf32>
    %293 = arith.subf %283, %292 : vector<16x32xf32>
    %294 = arith.mulf %293, %293 : vector<16x32xf32>
    %cst_136 = arith.constant dense<0.000000e+00> : vector<16xf32>
    %295 = vector.multi_reduction <add>, %294, %cst_136 [1] : vector<16x32xf32> to vector<16xf32>
    %296 = vector.shape_cast %295 : vector<16xf32> to vector<16x1xf32>
    %cst_137 = arith.constant 3.200000e+01 : f32
    %297 = vector.broadcast %cst_137 : f32 to vector<16x1xf32>
    %298 = arith.divf %296, %297 : vector<16x1xf32>
    %299 = vector.broadcast %291 : vector<16x1xf32> to vector<16x32xf32>
    %300 = arith.subf %283, %299 : vector<16x32xf32>
    %cst_138 = arith.constant 9.99999974E-6 : f32
    %301 = vector.broadcast %cst_138 : f32 to vector<16x1xf32>
    %302 = arith.addf %298, %301 : vector<16x1xf32>
    %303 = math.rsqrt %302 : vector<16x1xf32>
    %304 = vector.broadcast %303 : vector<16x1xf32> to vector<16x32xf32>
    %305 = arith.mulf %300, %304 : vector<16x32xf32>
    %306 = vector.broadcast %285 : vector<1x32xf32> to vector<16x32xf32>
    %307 = arith.mulf %305, %306 : vector<16x32xf32>
    %308 = vector.broadcast %287 : vector<1x32xf32> to vector<16x32xf32>
    %309 = arith.addf %307, %308 : vector<16x32xf32>
    %c0_139 = arith.constant 0 : index
    %c0_140 = arith.constant 0 : index
    %310 = vector.load %arg18[%c0_139, %c0_140] : memref<16x32xf32, #tpu.memory_space<vmem>>, vector<16x32xf32>
    tpu.vector_store %arg18[%c0_139, %c0_140], %309 {strides = array<i32>} : memref<16x32xf32, #tpu.memory_space<vmem>>, vector<16x32xf32>,
    %311 = vector.shape_cast %309 : vector<16x32xf32> to vector<2x8x32xf32>
    %312 = vector.extract_strided_slice %311 {offsets = [0, 0, 0], sizes = [2, 1, 32], strides = [1, 1, 1]} : vector<2x8x32xf32> to vector<2x1x32xf32>
    %313 = vector.shape_cast %312 : vector<2x1x32xf32> to vector<2x32xf32>
    %c0_141 = arith.constant 0 : index
    %c0_142 = arith.constant 0 : index
    %314 = vector.load %arg16[%c0_141, %c0_142] : memref<32x32xf32, #tpu.memory_space<vmem>>, vector<32x32xf32>
    %cst_143 = arith.constant dense<0.000000e+00> : vector<2x32xf32>
    %315 = tpu.matmul %313, %314, %cst_143 {dimension_numbers = #tpu.dot_dimension_numbers<[1], [0], [0], [1], [0, 0, 1, 1], [], []>} : vector<2x32xf32>, vector<32x32xf32>, vector<2x32xf32> -> vector<2x32xf32>
    %c0_144 = arith.constant 0 : index
    %c0_145 = arith.constant 0 : index
    %316 = vector.load %arg17[%c0_144, %c0_145] : memref<1x32xf32, #tpu.memory_space<vmem>>, vector<1x32xf32>
    %317 = vector.broadcast %316 : vector<1x32xf32> to vector<2x32xf32>
    %318 = arith.addf %315, %317 : vector<2x32xf32>
    %319 = math.tanh %318 : vector<2x32xf32>
    %c0_146 = arith.constant 0 : index
    %c0_147 = arith.constant 0 : index
    %320 = vector.load %arg19[%c0_146, %c0_147] : memref<2x32xf32, #tpu.memory_space<vmem>>, vector<2x32xf32>
    tpu.vector_store %arg19[%c0_146, %c0_147], %319 {strides = array<i32>} : memref<2x32xf32, #tpu.memory_space<vmem>>, vector<2x32xf32>,
    return
  }
}

</mosaic_0001>

<bundles_post_ra>
// kernel: encoder_forward.1
= control target key start
LH: loop header
LB: loop body
LE: loop exit
PB: predicated region body
PF: predicated region fallthrough
CT: control target
= control target key end

     0   :  { %s3632_s0 = inlined_call_operand.vmem [shape: f32[16,32], index: 0, kind: input, shape index: {}]   ;;  %s3633_s1 = inlined_call_operand.vmem [shape: f32[2,1,8], index: 1, kind: input, shape index: {}]   ;;  %s3634_s2 = inlined_call_operand.vmem [shape: f32[1,32], index: 2, kind: input, shape index: {}]   ;;  %s3635_s3 = inlined_call_operand.vmem [shape: f32[1,32], index: 3, kind: input, shape index: {}]   ;;  %s3636_s4 = inlined_call_operand.vmem [shape: f32[2,32,96], index: 4, kind: input, shape index: {}]   ;;  %s3637_s5 = inlined_call_operand.vmem [shape: f32[2,1,96], index: 5, kind: input, shape index: {}]   ;;  %s3638_s6 = inlined_call_operand.vmem [shape: f32[2,32,32], index: 6, kind: input, shape index: {}]   ;;  %s3639_s7 = inlined_call_operand.vmem [shape: f32[2,1,32], index: 7, kind: input, shape index: {}]   ;;  %s3640_s8 = inlined_call_operand.vmem [shape: f32[2,1,32], index: 8, kind: input, shape index: {}]   ;;  %s3641_s9 = inlined_call_operand.vmem [shape: f32[2,1,32], index: 9, kind: input, shape index: {}]   ;;  %s3642_s10 = inlined_call_operand.vmem [shape: f32[2,32,64], index: 10, kind: input, shape index: {}]   ;;  %s3643_s11 = inlined_call_operand.vmem [shape: f32[2,1,64], index: 11, kind: input, shape index: {}]   ;;  %s3644_s12 = inlined_call_operand.vmem [shape: f32[2,64,32], index: 12, kind: input, shape index: {}]   ;;  %s3645_s13 = inlined_call_operand.vmem [shape: f32[2,1,32], index: 13, kind: input, shape index: {}]   ;;  %s3646_s14 = inlined_call_operand.vmem [shape: f32[2,1,32], index: 14, kind: input, shape index: {}]   ;;  %s3647_s15 = inlined_call_operand.vmem [shape: f32[2,1,32], index: 15, kind: input, shape index: {}]   ;;  %s3648_s16 = inlined_call_operand.vmem [shape: f32[32,32], index: 16, kind: input, shape index: {}]   ;;  %s3649_s17 = inlined_call_operand.vmem [shape: f32[1,32], index: 17, kind: input, shape index: {}]   ;;  %s3650_s18 = inlined_call_operand.hbm [shape: f32[16,32], index: 18, kind: output, shape index: {0}]   ;;  %s3651_s19 = inlined_call_operand.hbm [shape: f32[2,32], index: 19, kind: output, shape index: {1}]  }
   0x1   :  { %3654 = sst [smem:[#allocation8_spill]] %s3632_s0 }
   0x2   :  { %3655 = sst [smem:[#allocation9_spill]] %s3633_s1 }
   0x3   :  { %3656 = sst [smem:[#allocation10_spill]] %s3634_s2 }
   0x4   :  { %3657 = sst [smem:[#allocation11_spill]] %s3635_s3 }
   0x5   :  { %25 = vsyncpa [#allocation3], 0  ;;  %s3658_s20 = sld [smem:[#allocation8_spill]]  ;;  %vm69_vm0 = vcmask 261120  }
   0xb   :  { %v65_v0 = vld [vmem:[%s3658_s20] sm:$0xff]  ;;  %v66_v1 = vld [vmem:[%s3658_s20 + $0x8] sm:$0xff] }
   0xc   :  { %26 = vsyncpa [#allocation5], 0  ;;  %v70_v2 = vsel %vm69_vm0, %v65_v0, 0.0  ;;  %v73_v3 = vsel %vm69_vm0, %v66_v1, 0.0  ;;  %v116_v14 = vld [vmem:[%s3636_s4 + $0x18] sm:$0xff]  ;;  %v115_v15 = vld [vmem:[%s3636_s4 + $0x10] sm:$0xff] }
   0xd   :  { %71 = vadd.xlane.f32.xlu0 %v70_v2  ;;  %2762 = vmatprep.subr.mxu0 %v116_v14  ;;  %v114_v16 = vld [vmem:[%s3636_s4 + $0x8] sm:$0xff]  ;;  %v113_v17 = vld [vmem:[%s3636_s4] sm:$0xff]  ;;  %s3659_s0 = sld [smem:[#allocation10_spill]]  ;;  %v3075_v34 = vmov 0.0   ;;  %vm3076_vm1 = vmmov 0   ;;  %s3077_s2 = smov 96  }
   0xe   :  { %2763 = vmatpush3.msra.mxu0 %v116_v14  ;;  %s3660_s21 = sld [smem:[#allocation11_spill]]  ;;  %2773 = vmatprep.subr.mxu1 %v3075_v34  ;;  %v2581_v35 = vld [vmem:[%s3637_s5] ss:$0 sm:$0xff]  ;;  %vm208_vm2 = vcmask 130048   ;;  %vm376_vm3 = vcmask 64512   ;;  %s3078_s27 = smov 64  }
   0xf   :  { %2764 = vmatprep.subr.mxu0 %v115_v15  ;;  %2775 = vmatprep.mubr.msk.f32.mxu1 %vm3076_vm1, %v3075_v34  ;;  %s3661_s25 = sld [smem:[#allocation9_spill]]  ;;  %s3079_s28 = smov 80   ;;  %vm1158_vm4 = vcmask 523264   ;;  %vm2472_vm5 = vcmask 1041409  }
  0x10   :  { %2765 = vmatpush3.msra.mxu0 %v115_v15  ;;  %s3080_s29 = smov 112   ;;  %s3082_s3 = smov 16  }
  0x11   :  { %74 = vadd.xlane.f32.xlu0 %v73_v3  ;;  %2766 = vmatprep.subr.mxu0 %v114_v16 }
  0x12   :  { %2767 = vmatpush3.msra.mxu0 %v114_v16 }
  0x13   :  { %2768 = vmatprep.subr.mxu0 %v113_v17  ;;  %v2579_v25 = vld [vmem:[%s3659_s0] ss:$0 sm:$0xff]  ;;  %s3081_s0 = smov 48  }
  0x14   :  { %2769 = vmatpush3.msra.mxu0 %v113_v17  ;;  %v2580_v27 = vld [vmem:[%s3660_s21] ss:$0 sm:$0xff] }
  0x15   :  { %2793 = vmatprep.subr.mxu0 %v3075_v34  ;;  %v3255_v43 = vld [vmem:[%s3661_s25] ss:$0 sm:$0xff]  ;;  %v3261_v48 = vld [vmem:[%s3661_s25 + $0x1] ss:$0 sm:$0xff] }
  0x96   :  { %v72_v4 = vpop.xlane.xlu0 %71 }
  0x97   :  { %v77_v5 = vmul.f32 0.03125, %v72_v4 }
  0x99   :  { %v79_v6 = vsub.f32 %v65_v0, %v77_v5 }
  0x9a   :  { %v75_v7 = vpop.xlane.xlu0 %74 }
  0x9b   :  { %v78_v8 = vmul.f32 0.03125, %v75_v7  ;;  %v81_v9 = vmul.f32 %v79_v6, %v79_v6 }
  0x9d   :  { %v80_v10 = vsub.f32 %v66_v1, %v78_v8  ;;  %v83_v11 = vsel %vm69_vm0, %v81_v9, 0.0 }
  0x9e   :  { %84 = vadd.xlane.f32.xlu1 %v83_v11 }
  0x9f   :  { %v82_v12 = vmul.f32 %v80_v10, %v80_v10 }
  0xa1   :  { %v86_v13 = vsel %vm69_vm0, %v82_v12, 0.0 }
  0xa2   :  { %87 = vadd.xlane.f32.xlu1 %v86_v13 }
 0x127   :  { %v85_v18 = vpop.xlane.xlu1 %84 }
 0x128   :  { %v89_v19 = vmul.f32 0.03125, %v85_v18 }
 0x12a   :  { %v91_v20 = vadd.f32 1e-05, %v89_v19 }
 0x12b   :  { %v88_v21 = vpop.xlane.xlu1 %87 }
 0x12c   :  { %2969 = vrsqrt.f32 %v91_v20  ;;  %v90_v22 = vmul.f32 0.03125, %v88_v21 }
 0x12e   :  { %v92_v23 = vadd.f32 1e-05, %v90_v22 }
 0x130   :  { %2971 = vrsqrt.f32 %v92_v23 }
 0x139   :  { %v2970_v24 = vpop.eup %2969 }
 0x13a   :  { %v95_v26 = vmul.f32 %v2970_v24, %v79_v6 }
 0x13c   :  { %v103_v28 = vmul.f32 %v2579_v25, %v95_v26 }
 0x13d   :  { %v2972_v29 = vpop.eup %2971 }
 0x13e   :  { %v96_v30 = vmul.f32 %v2972_v29, %v80_v10  ;;  %v3215_v31 = vadd.f32 %v2580_v27, %v103_v28 }
 0x140   :  { %v104_v32 = vmul.f32 %v2579_v25, %v96_v30  ;;  %2770 = vmatprep.mubr.msk.f32.mxu0 %vm69_vm0, %v3215_v31 }
 0x142   :  { %v3219_v33 = vadd.f32 %v2580_v27, %v104_v32 }
 0x144   :  { %2771 = vmatmul.mubr.msk.f32.vlgmr.msra.gmra.mxu0 %vm69_vm0, %v3219_v33 }
 0x145   :  { %2795 = vmatprep.mubr.msk.f32.mxu0 %vm3076_vm1, %v3075_v34 }
 0x204   :  { %v2772_v36 = vpop.f32.mrf.mxu0 }
 0x205   :  { %v3232_v37 = vadd.f32 %v2772_v36, %v2581_v35 }
 0x206   :  { %v196_v38 = vpop.f32.mrf.mxu0 }
 0x207   :  { %v3234_v39 = vadd.f32 %v2581_v35, %v196_v38  ;;  %284 = vrot.lane.b32.xlu1 %v3232_v37, %s3077_s2 }
 0x209   :  { %206 = vrot.lane.b32.xlu0 %v3234_v39, %s3077_s2 }
 0x279   :  { %v285_v41 = vpop.permute.xlu1 %284 }
 0x27b   :  { %v207_v40 = vpop.permute.xlu0 %206 }
 0x27c   :  { %2774 = vmatpush3.xpose.msk.msra.mxu1 %vm208_vm2, %v207_v40 }
 0x27d   :  { %2778 = vmatprep.subr.mxu1 %v3075_v34 }
 0x27f   :  { %2776 = vmatmul.mubr.msk.f32.vlgmr.msra.gmra.mxu1 %vm208_vm2, %v3234_v39 }
 0x280   :  { %2779 = vmatpush3.xpose.msk.msra.mxu1 %vm208_vm2, %v285_v41  ;;  %2780 = vmatprep.mubr.msk.f32.mxu1 %vm3076_vm1, %v3075_v34 }
 0x281   :  { %2783 = vmatprep.subr.mxu1 %v3075_v34 }
 0x283   :  { %2781 = vmatmul.mubr.msk.f32.vlgmr.msra.gmra.mxu1 %vm208_vm2, %v3232_v37 }
 0x284   :  { %2785 = vmatprep.mubr.msk.f32.mxu1 %vm3076_vm1, %v3075_v34 }
 0x33f   :  { %v279_v42 = vpop.f32.mrf.mxu1 }
 0x340   :  { %v360_v44 = vmul.f32 0.25, %v279_v42 }
 0x341   :  { %v2777_v45 = vpop.f32.mrf.mxu1 }
 0x342   :  { %v374_v46 = vadd.f32 %v3255_v43, %v360_v44 }
 0x343   :  { %v356_v47 = vpop.f32.mrf.mxu1 }
 0x344   :  { %v361_v49 = vmul.f32 0.25, %v356_v47  ;;  %v377_v50 = vsel %vm376_vm3, %v374_v46, -inf }
 0x345   :  { %v2782_v51 = vpop.f32.mrf.mxu1  ;;  %378 = vmax.xlane.f32.xlu1 %v377_v50  ;;  %v898_v50 = vld [vmem:[%s3638_s6 + $0x18] sm:$0xff] }
 0x346   :  { %v375_v52 = vadd.f32 %v3261_v48, %v361_v49  ;;  %v896_v51 = vld [vmem:[%s3638_s6 + $0x8] sm:$0xff] }
 0x348   :  { %v380_v53 = vsel %vm376_vm3, %v375_v52, -inf }
 0x349   :  { %381 = vmax.xlane.f32.xlu0 %v380_v53 }
 0x356   :  { %475 = vrot.lane.b32.xlu1 %v3232_v37, %s3078_s27 }
 0x35a   :  { %553 = vrot.lane.b32.xlu1 %v3234_v39, %s3079_s28 }
 0x35e   :  { %631 = vrot.lane.b32.xlu1 %v3232_v37, %s3079_s28 }
 0x3ce   :  { %v379_v54 = vpop.xlane.xlu1 %378 }
 0x3cf   :  { %v383_v55 = vsub.f32 %v374_v46, %v379_v54 }
 0x3d1   :  { %v385_v56 = vmul.f32 1.442695, %v383_v55 }
 0x3d2   :  { %v382_v57 = vpop.xlane.xlu0 %381  ;;  %v476_v58 = vpop.permute.xlu1 %475 }
 0x3d3   :  { %2973 = vpow2.f32 %v385_v56  ;;  %v384_v59 = vsub.f32 %v375_v52, %v382_v57  ;;  %v895_v52 = vld [vmem:[%s3638_s6] sm:$0xff] }
 0x3d5   :  { %v387_v60 = vmul.f32 1.442695, %v384_v59 }
 0x3d6   :  { %v554_v61 = vpop.permute.xlu1 %553 }
 0x3d7   :  { %2975 = vpow2.f32 %v387_v60  ;;  %2794 = vmatpush3.xpose.msk.msra.mxu0 %vm208_vm2, %v554_v61  ;;  %v2598_v61 = vld [vmem:[%s3639_s7] ss:$0 sm:$0xff] }
 0x3d8   :  { %2803 = vmatprep.subr.mxu0 %v3075_v34 }
 0x3da   :  { %v632_v2 = vpop.permute.xlu1 %631 }
 0x3e0   :  { %v2974_v62 = vpop.eup %2973 }
 0x3e1   :  { %v389_v63 = vsel %vm376_vm3, %v2974_v62, 0.0 }
 0x3e2   :  { %390 = vadd.xlane.f32.xlu0 %v389_v63 }
 0x3e4   :  { %v2976_v0 = vpop.eup %2975 }
 0x3e5   :  { %v392_v1 = vsel %vm376_vm3, %v2976_v0, 0.0 }
 0x3e6   :  { %393 = vadd.xlane.f32.xlu1 %v392_v1 }
 0x3f7   :  { %629 = vrot.lane.b32.xlu1 %v3232_v37, %s3080_s29 }
 0x3f8   :  { %399 = vrot.lane.b32.xlu0 %v3234_v39, %s3078_s27 }
 0x3fc   :  { %551 = vrot.lane.b32.xlu0 %v3234_v39, %s3080_s29 }
 0x46b   :  { %v391_v3 = vpop.xlane.xlu0 %390 }
 0x46c   :  { %2977 = vrcp.f32 %v391_v3 }
 0x46f   :  { %v400_v4 = vpop.permute.xlu0 %399  ;;  %v394_v5 = vpop.xlane.xlu1 %393 }
 0x470   :  { %2979 = vrcp.f32 %v394_v5  ;;  %2784 = vmatpush3.msra.mxu1 %v400_v4 }
 0x471   :  { %2788 = vmatprep.subr.mxu1 %v3075_v34 }
 0x473   :  { %v552_v6 = vpop.permute.xlu0 %551  ;;  %v630_v11 = vpop.permute.xlu1 %629 }
 0x474   :  { %2796 = vmatmul.mubr.msk.f32.vlgmr.msra.gmra.mxu0 %vm208_vm2, %v552_v6 }
 0x475   :  { %2805 = vmatprep.mubr.msk.f32.mxu0 %vm3076_vm1, %v3075_v34 }
 0x479   :  { %v2978_v7 = vpop.eup %2977 }
 0x47a   :  { %v397_v8 = vmul.f32 %v2978_v7, %v2974_v62 }
 0x47c   :  { %2786 = vmatmul.mubr.msk.f32.vlgmr.msra.gmra.mxu1 %vm376_vm3, %v397_v8 }
 0x47d   :  { %v2980_v9 = vpop.eup %2979  ;;  %2789 = vmatpush3.msra.mxu1 %v476_v58  ;;  %2790 = vmatprep.mubr.msk.f32.mxu1 %vm3076_vm1, %v3075_v34 }
 0x47e   :  { %2798 = vmatprep.subr.mxu1 %v3075_v34  ;;  %v398_v10 = vmul.f32 %v2980_v9, %v2976_v0 }
 0x480   :  { %2791 = vmatmul.mubr.msk.f32.vlgmr.msra.gmra.mxu1 %vm376_vm3, %v398_v10 }
 0x481   :  { %2799 = vmatpush3.xpose.msk.msra.mxu1 %vm208_vm2, %v632_v2  ;;  %2800 = vmatprep.mubr.msk.f32.mxu1 %vm3076_vm1, %v3075_v34 }
 0x482   :  { %2808 = vmatprep.subr.mxu1 %v3075_v34 }
 0x484   :  { %2801 = vmatmul.mubr.msk.f32.vlgmr.msra.gmra.mxu1 %vm208_vm2, %v630_v11 }
 0x485   :  { %2810 = vmatprep.mubr.msk.f32.mxu1 %vm3076_vm1, %v3075_v34 }
 0x534   :  { %v625_v12 = vpop.f32.mrf.mxu0 }
 0x535   :  { %v707_v13 = vmul.f32 0.25, %v625_v12 }
 0x536   :  { %v2797_v14 = vpop.f32.mrf.mxu0 }
 0x537   :  { %v709_v15 = vadd.f32 %v3255_v43, %v707_v13 }
 0x539   :  { %v711_v16 = vsel %vm376_vm3, %v709_v15, -inf }
 0x53a   :  { %712 = vmax.xlane.f32.xlu0 %v711_v16  ;;  %v1034_v16 = vld [vmem:[%s3642_s10 + $0x8] sm:$0xff] }
 0x53c   :  { %v471_v17 = vpop.f32.mrf.mxu1 }
 0x53e   :  { %v2787_v18 = vpop.f32.mrf.mxu1 }
 0x540   :  { %v3300_v19 = vpop.f32.mrf.mxu1 }
 0x542   :  { %v2792_v20 = vpop.f32.mrf.mxu1 }
 0x544   :  { %v703_v21 = vpop.f32.mrf.mxu1 }
 0x545   :  { %v708_v22 = vmul.f32 0.25, %v703_v21 }
 0x546   :  { %v2802_v23 = vpop.f32.mrf.mxu1 }
 0x547   :  { %v710_v24 = vadd.f32 %v3261_v48, %v708_v22 }
 0x549   :  { %v714_v25 = vsel %vm376_vm3, %v710_v24, -inf }
 0x54a   :  { %715 = vmax.xlane.f32.xlu1 %v714_v25  ;;  %v2601_v25 = vld [vmem:[%s3640_s8] ss:$0 sm:$0xff] }
 0x55b   :  { %809 = vrot.lane.b32.xlu1 %v3232_v37, %s3081_s0 }
 0x5c3   :  { %v713_v26 = vpop.xlane.xlu0 %712 }
 0x5c4   :  { %v717_v27 = vsub.f32 %v709_v15, %v713_v26  ;;  %v1035_v15 = vld [vmem:[%s3642_s10 + $0x10] sm:$0xff] }
 0x5c6   :  { %v719_v28 = vmul.f32 1.442695, %v717_v27  ;;  %v2602_v27 = vld [vmem:[%s3641_s9] ss:$0 sm:$0xff] }
 0x5c8   :  { %2981 = vpow2.f32 %v719_v28 }
 0x5d3   :  { %v716_v29 = vpop.xlane.xlu1 %715 }
 0x5d4   :  { %v718_v30 = vsub.f32 %v710_v24, %v716_v29 }
 0x5d5   :  { %v2982_v32 = vpop.eup %2981 }
 0x5d6   :  { %v721_v35 = vmul.f32 1.442695, %v718_v30  ;;  %v723_v36 = vsel %vm376_vm3, %v2982_v32, 0.0 }
 0x5d7   :  { %724 = vadd.xlane.f32.xlu0 %v723_v36  ;;  %v810_v38 = vpop.permute.xlu1 %809 }
 0x5d8   :  { %2983 = vpow2.f32 %v721_v35  ;;  %2809 = vmatpush3.msra.mxu1 %v810_v38  ;;  %v1150_v38 = vld [vmem:[%s3644_s12 + $0x38] sm:$0xff] }
 0x5e5   :  { %v2984_v40 = vpop.eup %2983 }
 0x5e6   :  { %v726_v41 = vsel %vm376_vm3, %v2984_v40, 0.0 }
 0x5e7   :  { %727 = vadd.xlane.f32.xlu0 %v726_v41  ;;  %v1148_v41 = vld [vmem:[%s3644_s12 + $0x28] sm:$0xff] }
 0x5fd   :  { %733 = vrot.lane.b32.xlu0 %v3234_v39, %s3081_s0  ;;  %v897_v39 = vld [vmem:[%s3638_s6 + $0x10] sm:$0xff] }
 0x660   :  { %v725_v37 = vpop.xlane.xlu0 %724 }
 0x661   :  { %2985 = vrcp.f32 %v725_v37  ;;  %v1147_v37 = vld [vmem:[%s3644_s12 + $0x20] sm:$0xff] }
 0x66e   :  { %v2986_v44 = vpop.eup %2985 }
 0x66f   :  { %v731_v46 = vmul.f32 %v2986_v44, %v2982_v32  ;;  %v1145_v44 = vld [vmem:[%s3644_s12 + $0x10] sm:$0xff] }
 0x670   :  { %v728_v42 = vpop.xlane.xlu0 %727 }
 0x671   :  { %2987 = vrcp.f32 %v728_v42  ;;  %v1146_v42 = vld [vmem:[%s3644_s12 + $0x18] sm:$0xff] }
 0x674   :  { %v734_v45 = vpop.permute.xlu0 %733 }
 0x675   :  { %2804 = vmatpush3.msra.mxu0 %v734_v45  ;;  %v1144_v45 = vld [vmem:[%s3644_s12 + $0x8] sm:$0xff] }
 0x676   :  { %2806 = vmatmul.mubr.msk.f32.vlgmr.msra.gmra.mxu0 %vm376_vm3, %v731_v46  ;;  %2813 = vmatprep.subr.mxu0 %v898_v50  ;;  %v1143_v46 = vld [vmem:[%s3644_s12] sm:$0xff] }
 0x677   :  { %2814 = vmatpush3.msra.mxu0 %v898_v50 }
 0x678   :  { %2815 = vmatprep.subr.mxu0 %v897_v39 }
 0x679   :  { %2816 = vmatpush3.msra.mxu0 %v897_v39 }
 0x67a   :  { %2817 = vmatprep.subr.mxu0 %v896_v51 }
 0x67b   :  { %2818 = vmatpush3.msra.mxu0 %v896_v51 }
 0x67c   :  { %2819 = vmatprep.subr.mxu0 %v895_v52 }
 0x67d   :  { %2820 = vmatpush3.msra.mxu0 %v895_v52 }
 0x67e   :  { %v2988_v47 = vpop.eup %2987  ;;  %2835 = vmatprep.subr.mxu0 %v1150_v38 }
 0x67f   :  { %v732_v49 = vmul.f32 %v2988_v47, %v2984_v40  ;;  %v1149_v40 = vld [vmem:[%s3644_s12 + $0x30] sm:$0xff]  ;;  %v2603_v47 = vld [vmem:[%s3643_s11] ss:$0 sm:$0xff] }
 0x681   :  { %2811 = vmatmul.mubr.msk.f32.vlgmr.msra.gmra.mxu1 %vm376_vm3, %v732_v49 }
 0x736   :  { %v805_v53 = vpop.f32.mrf.mxu0 }
 0x737   :  { %887 = vrot.lane.b32.xlu1 %v805_v53, %s3082_s3 }
 0x738   :  { %v2807_v54 = vpop.f32.mrf.mxu0 }
 0x741   :  { %v881_v55 = vpop.f32.mrf.mxu1 }
 0x742   :  { %889 = vrot.lane.b32.xlu1 %v881_v55, %s3082_s3 }
 0x743   :  { %v2812_v56 = vpop.f32.mrf.mxu1 }
 0x7a9   :  { %v888_v57 = vpop.permute.xlu1 %887 }
 0x7aa   :  { %v893_v58 = vsel %vm208_vm2, %v471_v17, %v888_v57  ;;  %v1033_v17 = vld [vmem:[%s3642_s10] sm:$0xff] }
 0x7ab   :  { %2821 = vmatprep.mubr.msk.f32.mxu0 %vm69_vm0, %v893_v58 }
 0x7b4   :  { %v890_v59 = vpop.permute.xlu1 %889 }
 0x7b5   :  { %v894_v60 = vsel %vm208_vm2, %v3300_v19, %v890_v59 }
 0x7b6   :  { %2822 = vmatmul.mubr.msk.f32.vlgmr.msra.gmra.mxu0 %vm69_vm0, %v894_v60 }
 0x7b7   :  { %2836 = vmatpush3.msra.mxu0 %v1150_v38  ;;  %v2609_v38 = vld [vmem:[%s3646_s14] ss:$0 sm:$0xff] }
 0x7b8   :  { %2837 = vmatprep.subr.mxu0 %v1149_v40 }
 0x7b9   :  { %2838 = vmatpush3.msra.mxu0 %v1149_v40 }
 0x7ba   :  { %2839 = vmatprep.subr.mxu0 %v1148_v41 }
 0x7bb   :  { %2840 = vmatpush3.msra.mxu0 %v1148_v41 }
 0x7bc   :  { %2841 = vmatprep.subr.mxu0 %v1147_v37 }
 0x7bd   :  { %2842 = vmatpush3.msra.mxu0 %v1147_v37 }
 0x7be   :  { %2843 = vmatprep.subr.mxu0 %v1146_v42 }
 0x7bf   :  { %2844 = vmatpush3.msra.mxu0 %v1146_v42 }
 0x7c0   :  { %2845 = vmatprep.subr.mxu0 %v1145_v44 }
 0x7c1   :  { %2846 = vmatpush3.msra.mxu0 %v1145_v44  ;;  %v2610_v44 = vld [vmem:[%s3647_s15] ss:$0 sm:$0xff] }
 0x7c2   :  { %2847 = vmatprep.subr.mxu0 %v1144_v45 }
 0x7c3   :  { %2848 = vmatpush3.msra.mxu0 %v1144_v45 }
 0x7c4   :  { %2849 = vmatprep.subr.mxu0 %v1143_v46 }
 0x7c5   :  { %2850 = vmatpush3.msra.mxu0 %v1143_v46 }
 0x7c6   :  { %2875 = vmatprep.subr.mxu0 %v3075_v34 }
 0x876   :  { %v2823_v62 = vpop.f32.mrf.mxu0 }
 0x877   :  { %v984_v63 = vadd.f32 %v2823_v62, %v2598_v61 }
 0x878   :  { %v978_v0 = vpop.f32.mrf.mxu0 }
 0x879   :  { %v979_v1 = vadd.f32 %v2598_v61, %v978_v0  ;;  %v988_v2 = vadd.f32 %v984_v63, %v3219_v33 }
 0x87b   :  { %v994_v3 = vsel %vm69_vm0, %v988_v2, 0.0  ;;  %v987_v4 = vadd.f32 %v979_v1, %v3215_v31  ;;  %v1036_v31 = vld [vmem:[%s3642_s10 + $0x18] sm:$0xff] }
 0x87c   :  { %995 = vadd.xlane.f32.xlu1 %v994_v3  ;;  %2824 = vmatprep.subr.mxu1 %v1036_v31 }
 0x87d   :  { %v991_v5 = vsel %vm69_vm0, %v987_v4, 0.0  ;;  %2825 = vmatpush3.msra.mxu1 %v1036_v31 }
 0x87e   :  { %992 = vadd.xlane.f32.xlu0 %v991_v5  ;;  %2826 = vmatprep.subr.mxu1 %v1035_v15 }
 0x87f   :  { %2827 = vmatpush3.msra.mxu1 %v1035_v15 }
 0x880   :  { %2828 = vmatprep.subr.mxu1 %v1034_v16 }
 0x881   :  { %2829 = vmatpush3.msra.mxu1 %v1034_v16 }
 0x882   :  { %2830 = vmatprep.subr.mxu1 %v1033_v17 }
 0x883   :  { %2831 = vmatpush3.msra.mxu1 %v1033_v17 }
 0x905   :  { %v996_v6 = vpop.xlane.xlu1 %995 }
 0x906   :  { %v998_v7 = vmul.f32 0.03125, %v996_v6  ;;  %v2606_v6 = vld [vmem:[%s3645_s13] ss:$0 sm:$0xff] }
 0x907   :  { %v993_v8 = vpop.xlane.xlu0 %992 }
 0x908   :  { %v997_v9 = vmul.f32 0.03125, %v993_v8  ;;  %v1000_v10 = vsub.f32 %v988_v2, %v998_v7 }
 0x90a   :  { %v999_v11 = vsub.f32 %v987_v4, %v997_v9  ;;  %v1002_v14 = vmul.f32 %v1000_v10, %v1000_v10 }
 0x90c   :  { %v1001_v12 = vmul.f32 %v999_v11, %v999_v11  ;;  %v1006_v33 = vsel %vm69_vm0, %v1002_v14, 0.0 }
 0x90e   :  { %v1003_v13 = vsel %vm69_vm0, %v1001_v12, 0.0 }
 0x90f   :  { %1004 = vadd.xlane.f32.xlu0 %v1003_v13 }
 0x913   :  { %1007 = vadd.xlane.f32.xlu0 %v1006_v33 }
 0x998   :  { %v1005_v18 = vpop.xlane.xlu0 %1004 }
 0x999   :  { %v1009_v19 = vmul.f32 0.03125, %v1005_v18 }
 0x99b   :  { %v1011_v20 = vadd.f32 1e-05, %v1009_v19 }
 0x99c   :  { %v1008_v21 = vpop.xlane.xlu0 %1007 }
 0x99d   :  { %2989 = vrsqrt.f32 %v1011_v20  ;;  %v1010_v22 = vmul.f32 0.03125, %v1008_v21 }
 0x99f   :  { %v1012_v23 = vadd.f32 1e-05, %v1010_v22 }
 0x9a1   :  { %2991 = vrsqrt.f32 %v1012_v23  ;;  %v2614_v23 = vld [vmem:[%s3636_s4 + $0x38] sm:$0xff] }
 0x9a2   :  { %2854 = vmatprep.subr.mxu1 %v2614_v23 }
 0x9aa   :  { %v2990_v24 = vpop.eup %2989 }
 0x9ab   :  { %v1015_v26 = vmul.f32 %v2990_v24, %v999_v11  ;;  %v2613_v24 = vld [vmem:[%s3636_s4 + $0x30] sm:$0xff] }
 0x9ad   :  { %v1023_v28 = vmul.f32 %v2601_v25, %v1015_v26  ;;  %v2611_v26 = vld [vmem:[%s3636_s4 + $0x20] sm:$0xff] }
 0x9ae   :  { %v2992_v29 = vpop.eup %2991 }
 0x9af   :  { %v1016_v30 = vmul.f32 %v2992_v29, %v1000_v10  ;;  %v3358_v32 = vadd.f32 %v2602_v27, %v1023_v28 }
 0x9b1   :  { %v1024_v35 = vmul.f32 %v2601_v25, %v1016_v30  ;;  %2832 = vmatprep.mubr.msk.f32.mxu1 %vm69_vm0, %v3358_v32  ;;  %v2612_v25 = vld [vmem:[%s3636_s4 + $0x28] sm:$0xff] }
 0x9b3   :  { %v1032_v36 = vadd.f32 %v2602_v27, %v1024_v35 }
 0x9b5   :  { %2833 = vmatmul.mubr.msk.f32.vlgmr.msra.gmra.mxu1 %vm69_vm0, %v1032_v36 }
 0x9b6   :  { %2855 = vmatpush3.msra.mxu1 %v2614_v23 }
 0x9b7   :  { %2856 = vmatprep.subr.mxu1 %v2613_v24 }
 0x9b8   :  { %2857 = vmatpush3.msra.mxu1 %v2613_v24 }
 0x9b9   :  { %2858 = vmatprep.subr.mxu1 %v2612_v25 }
 0x9ba   :  { %2859 = vmatpush3.msra.mxu1 %v2612_v25 }
 0x9bb   :  { %2860 = vmatprep.subr.mxu1 %v2611_v26 }
 0x9bc   :  { %2861 = vmatpush3.msra.mxu1 %v2611_v26 }
 0x9bd   :  { %2865 = vmatprep.subr.mxu1 %v3075_v34 }
 0xa75   :  { %v2834_v49 = vpop.f32.mrf.mxu1 }
 0xa76   :  { %v1122_v50 = vadd.f32 %v2834_v49, %v2603_v47  ;;  %v2616_v49 = vld [vmem:[%s3637_s5 + $0x1] ss:$0 sm:$0xff] }
 0xa77   :  { %v1116_v39 = vpop.f32.mrf.mxu1 }
 0xa78   :  { %v1126_v51 = vmul.f32 %v1122_v50, %v1122_v50  ;;  %v1117_v52 = vadd.f32 %v2603_v47, %v1116_v39 }
 0xa7a   :  { %v1128_v53 = vmul.f32 %v1126_v51, %v1122_v50  ;;  %v1125_v54 = vmul.f32 %v1117_v52, %v1117_v52 }
 0xa7c   :  { %v1130_v55 = vmul.f32 0.044715, %v1128_v53  ;;  %v1127_v56 = vmul.f32 %v1125_v54, %v1117_v52 }
 0xa7e   :  { %v1132_v57 = vadd.f32 %v1130_v55, %v1122_v50  ;;  %v1129_v58 = vmul.f32 0.044715, %v1127_v56 }
 0xa80   :  { %v1134_v59 = vmul.f32 0.7978846, %v1132_v57  ;;  %v1131_v60 = vadd.f32 %v1129_v58, %v1117_v52 }
 0xa82   :  { %2993 = vtanh.f32 %v1134_v59  ;;  %v1133_v61 = vmul.f32 0.7978846, %v1131_v60 }
 0xa84   :  { %2995 = vtanh.f32 %v1133_v61 }
 0xa8f   :  { %v2994_v62 = vpop.eup %2993 }
 0xa90   :  { %v1138_v63 = vadd.f32 1.0, %v2994_v62 }
 0xa91   :  { %v2996_v0 = vpop.eup %2995 }
 0xa92   :  { %v1137_v1 = vadd.f32 1.0, %v2996_v0  ;;  %v1140_v2 = vmul.f32 0.5, %v1138_v63 }
 0xa94   :  { %v1139_v3 = vmul.f32 0.5, %v1137_v1  ;;  %v1142_v5 = vmul.f32 %v1140_v2, %v1122_v50 }
 0xa96   :  { %v1141_v4 = vmul.f32 %v1139_v3, %v1117_v52 }
 0xa98   :  { %2851 = vmatprep.mubr.msk.f32.mxu0 %vm1158_vm4, %v1141_v4 }
 0xa99   :  { %2852 = vmatmul.mubr.msk.f32.vlgmr.msra.gmra.mxu0 %vm1158_vm4, %v1142_v5 }
 0xa9a   :  { %2877 = vmatprep.mubr.msk.f32.mxu0 %vm3076_vm1, %v3075_v34 }
 0xb59   :  { %v2853_v7 = vpop.f32.mrf.mxu0 }
 0xb5a   :  { %v1237_v8 = vadd.f32 %v2853_v7, %v2606_v6 }
 0xb5b   :  { %v1231_v9 = vpop.f32.mrf.mxu0 }
 0xb5c   :  { %v1232_v10 = vadd.f32 %v2606_v6, %v1231_v9  ;;  %v1241_v11 = vadd.f32 %v1237_v8, %v1032_v36 }
 0xb5e   :  { %v1247_v12 = vsel %vm69_vm0, %v1241_v11, 0.0  ;;  %v1240_v13 = vadd.f32 %v1232_v10, %v3358_v32 }
 0xb5f   :  { %1248 = vadd.xlane.f32.xlu1 %v1247_v12 }
 0xb60   :  { %v1244_v14 = vsel %vm69_vm0, %v1240_v13, 0.0 }
 0xb61   :  { %1245 = vadd.xlane.f32.xlu0 %v1244_v14 }
 0xbe8   :  { %v1249_v33 = vpop.xlane.xlu1 %1248 }
 0xbe9   :  { %v1251_v31 = vmul.f32 0.03125, %v1249_v33 }
 0xbea   :  { %v1246_v15 = vpop.xlane.xlu0 %1245 }
 0xbeb   :  { %v1253_v16 = vsub.f32 %v1241_v11, %v1251_v31  ;;  %v1250_v17 = vmul.f32 0.03125, %v1246_v15 }
 0xbed   :  { %v1252_v18 = vsub.f32 %v1240_v13, %v1250_v17  ;;  %v1255_v19 = vmul.f32 %v1253_v16, %v1253_v16 }
 0xbef   :  { %v1259_v20 = vsel %vm69_vm0, %v1255_v19, 0.0  ;;  %v1254_v21 = vmul.f32 %v1252_v18, %v1252_v18 }
 0xbf0   :  { %1260 = vadd.xlane.f32.xlu1 %v1259_v20 }
 0xbf1   :  { %v1256_v22 = vsel %vm69_vm0, %v1254_v21, 0.0 }
 0xbf2   :  { %1257 = vadd.xlane.f32.xlu0 %v1256_v22 }
 0xc79   :  { %v1261_v27 = vpop.xlane.xlu1 %1260 }
 0xc7a   :  { %v1263_v28 = vmul.f32 0.03125, %v1261_v27 }
 0xc7b   :  { %v1258_v29 = vpop.xlane.xlu0 %1257 }
 0xc7c   :  { %v1265_v30 = vadd.f32 1e-05, %v1263_v28  ;;  %v1262_v32 = vmul.f32 0.03125, %v1258_v29 }
 0xc7e   :  { %2997 = vrsqrt.f32 %v1265_v30  ;;  %v1264_v35 = vadd.f32 1e-05, %v1262_v32 }
 0xc80   :  { %2999 = vrsqrt.f32 %v1264_v35 }
 0xc8b   :  { %v2998_v36 = vpop.eup %2997 }
 0xc8c   :  { %v1269_v40 = vmul.f32 %v2998_v36, %v1253_v16 }
 0xc8d   :  { %v3000_v41 = vpop.eup %2999 }
 0xc8e   :  { %v1268_v37 = vmul.f32 %v3000_v41, %v1252_v18  ;;  %v1277_v42 = vmul.f32 %v2609_v38, %v1269_v40 }
 0xc90   :  { %v1276_v45 = vmul.f32 %v2609_v38, %v1268_v37  ;;  %v3424_v47 = vadd.f32 %v2610_v44, %v1277_v42 }
 0xc92   :  { %v3422_v46 = vadd.f32 %v2610_v44, %v1276_v45 }
 0xc94   :  { %2862 = vmatprep.mubr.msk.f32.mxu1 %vm69_vm0, %v3422_v46 }
 0xc95   :  { %2863 = vmatmul.mubr.msk.f32.vlgmr.msra.gmra.mxu1 %vm69_vm0, %v3424_v47 }
 0xc96   :  { %2867 = vmatprep.mubr.msk.f32.mxu1 %vm3076_vm1, %v3075_v34 }
 0xd55   :  { %v2864_v50 = vpop.f32.mrf.mxu1 }
 0xd56   :  { %v3435_v39 = vadd.f32 %v2864_v50, %v2616_v49 }
 0xd57   :  { %v1371_v51 = vpop.f32.mrf.mxu1 }
 0xd58   :  { %v3437_v52 = vadd.f32 %v2616_v49, %v1371_v51  ;;  %1458 = vrot.lane.b32.xlu1 %v3435_v39, %s3077_s2 }
 0xd5a   :  { %1381 = vrot.lane.b32.xlu0 %v3437_v52, %s3077_s2 }
 0xdca   :  { %v1459_v54 = vpop.permute.xlu1 %1458 }
 0xdcc   :  { %v1382_v53 = vpop.permute.xlu0 %1381 }
 0xdcd   :  { %2866 = vmatpush3.xpose.msk.msra.mxu1 %vm208_vm2, %v1382_v53 }
 0xdce   :  { %2870 = vmatprep.subr.mxu1 %v3075_v34 }
 0xdd0   :  { %2868 = vmatmul.mubr.msk.f32.vlgmr.msra.gmra.mxu1 %vm208_vm2, %v3437_v52 }
 0xdd1   :  { %2871 = vmatpush3.xpose.msk.msra.mxu1 %vm208_vm2, %v1459_v54  ;;  %2872 = vmatprep.mubr.msk.f32.mxu1 %vm3076_vm1, %v3075_v34 }
 0xdd2   :  { %2880 = vmatprep.subr.mxu1 %v3075_v34 }
 0xdd4   :  { %2873 = vmatmul.mubr.msk.f32.vlgmr.msra.gmra.mxu1 %vm208_vm2, %v3435_v39 }
 0xdd5   :  { %2882 = vmatprep.mubr.msk.f32.mxu1 %vm3076_vm1, %v3075_v34 }
 0xe90   :  { %v1453_v55 = vpop.f32.mrf.mxu1 }
 0xe91   :  { %v1534_v56 = vmul.f32 0.25, %v1453_v55 }
 0xe92   :  { %v2869_v57 = vpop.f32.mrf.mxu1 }
 0xe93   :  { %v1536_v58 = vadd.f32 %v3255_v43, %v1534_v56 }
 0xe94   :  { %v1530_v59 = vpop.f32.mrf.mxu1 }
 0xe95   :  { %v1535_v60 = vmul.f32 0.25, %v1530_v59  ;;  %v1538_v61 = vsel %vm376_vm3, %v1536_v58, -inf  ;;  %v2634_v59 = vld [vmem:[%s3638_s6 + $0x38] sm:$0xff] }
 0xe96   :  { %1539 = vmax.xlane.f32.xlu1 %v1538_v61  ;;  %v2874_v62 = vpop.f32.mrf.mxu1  ;;  %v2631_v61 = vld [vmem:[%s3638_s6 + $0x20] sm:$0xff] }
 0xe97   :  { %v1537_v63 = vadd.f32 %v3261_v48, %v1535_v60  ;;  %v2632_v60 = vld [vmem:[%s3638_s6 + $0x28] sm:$0xff] }
 0xe99   :  { %v1541_v0 = vsel %vm376_vm3, %v1537_v63, -inf }
 0xe9a   :  { %1542 = vmax.xlane.f32.xlu0 %v1541_v0 }
 0xea7   :  { %1636 = vrot.lane.b32.xlu1 %v3435_v39, %s3078_s27 }
 0xeab   :  { %1714 = vrot.lane.b32.xlu1 %v3437_v52, %s3079_s28 }
 0xeaf   :  { %1792 = vrot.lane.b32.xlu1 %v3435_v39, %s3079_s28 }
 0xf1f   :  { %v1540_v1 = vpop.xlane.xlu1 %1539 }
 0xf20   :  { %v1544_v2 = vsub.f32 %v1536_v58, %v1540_v1 }
 0xf22   :  { %v1546_v3 = vmul.f32 1.442695, %v1544_v2 }
 0xf23   :  { %v1637_v4 = vpop.permute.xlu1 %1636  ;;  %v1543_v5 = vpop.xlane.xlu0 %1542 }
 0xf24   :  { %3001 = vpow2.f32 %v1546_v3  ;;  %v1545_v6 = vsub.f32 %v1537_v63, %v1543_v5  ;;  %2881 = vmatpush3.msra.mxu1 %v1637_v4 }
 0xf25   :  { %2890 = vmatprep.subr.mxu1 %v3075_v34 }
 0xf26   :  { %v1548_v7 = vmul.f32 1.442695, %v1545_v6  ;;  %v2636_v6 = vld [vmem:[%s3639_s7 + $0x1] ss:$0 sm:$0xff] }
 0xf27   :  { %v1715_v12 = vpop.permute.xlu1 %1714 }
 0xf28   :  { %3003 = vpow2.f32 %v1548_v7 }
 0xf2b   :  { %v1793_v13 = vpop.permute.xlu1 %1792 }
 0xf31   :  { %v3002_v8 = vpop.eup %3001 }
 0xf32   :  { %v1550_v9 = vsel %vm376_vm3, %v3002_v8, 0.0 }
 0xf33   :  { %1551 = vadd.xlane.f32.xlu0 %v1550_v9 }
 0xf35   :  { %v3004_v10 = vpop.eup %3003 }
 0xf36   :  { %v1553_v11 = vsel %vm376_vm3, %v3004_v10, 0.0 }
 0xf37   :  { %1554 = vadd.xlane.f32.xlu1 %v1553_v11 }
 0xf48   :  { %1790 = vrot.lane.b32.xlu1 %v3435_v39, %s3080_s29 }
 0xf49   :  { %1560 = vrot.lane.b32.xlu0 %v3437_v52, %s3078_s27 }
 0xf4d   :  { %1712 = vrot.lane.b32.xlu0 %v3437_v52, %s3080_s29 }
 0xfbc   :  { %v1552_v14 = vpop.xlane.xlu0 %1551 }
 0xfbd   :  { %3005 = vrcp.f32 %v1552_v14 }
 0xfc0   :  { %v1555_v33 = vpop.xlane.xlu1 %1554  ;;  %v1561_v31 = vpop.permute.xlu0 %1560 }
 0xfc1   :  { %3007 = vrcp.f32 %v1555_v33  ;;  %2876 = vmatpush3.msra.mxu0 %v1561_v31 }
 0xfc2   :  { %2885 = vmatprep.subr.mxu0 %v3075_v34 }
 0xfc4   :  { %v1713_v19 = vpop.permute.xlu0 %1712  ;;  %v1791_v20 = vpop.permute.xlu1 %1790 }
 0xfca   :  { %v3006_v15 = vpop.eup %3005 }
 0xfcb   :  { %v1558_v16 = vmul.f32 %v3006_v15, %v3002_v8 }
 0xfcd   :  { %2878 = vmatmul.mubr.msk.f32.vlgmr.msra.gmra.mxu0 %vm376_vm3, %v1558_v16 }
 0xfce   :  { %v3008_v17 = vpop.eup %3007  ;;  %2886 = vmatpush3.xpose.msk.msra.mxu0 %vm208_vm2, %v1715_v12  ;;  %2887 = vmatprep.mubr.msk.f32.mxu0 %vm3076_vm1, %v3075_v34 }
 0xfcf   :  { %v1559_v18 = vmul.f32 %v3008_v17, %v3004_v10  ;;  %2895 = vmatprep.subr.mxu0 %v3075_v34 }
 0xfd1   :  { %2883 = vmatmul.mubr.msk.f32.vlgmr.msra.gmra.mxu1 %vm376_vm3, %v1559_v18  ;;  %2888 = vmatmul.mubr.msk.f32.vlgmr.msra.gmra.mxu0 %vm208_vm2, %v1713_v19 }
 0xfd2   :  { %2891 = vmatpush3.xpose.msk.msra.mxu1 %vm208_vm2, %v1793_v13  ;;  %2892 = vmatprep.mubr.msk.f32.mxu1 %vm3076_vm1, %v3075_v34 }
 0xfd3   :  { %2900 = vmatprep.subr.mxu1 %v3075_v34  ;;  %2897 = vmatprep.mubr.msk.f32.mxu0 %vm3076_vm1, %v3075_v34 }
 0xfd5   :  { %2893 = vmatmul.mubr.msk.f32.vlgmr.msra.gmra.mxu1 %vm208_vm2, %v1791_v20 }
 0xfd6   :  { %2902 = vmatprep.mubr.msk.f32.mxu1 %vm3076_vm1, %v3075_v34 }
0x108d   :  { %v3491_v21 = vpop.f32.mrf.mxu0 }
0x108f   :  { %v2879_v22 = vpop.f32.mrf.mxu0 }
0x1090   :  { %v2645_v22 = vld [vmem:[%s3642_s10 + $0x30] sm:$0xff] }
0x1091   :  { %v3493_v23 = vpop.f32.mrf.mxu1  ;;  %v1786_v24 = vpop.f32.mrf.mxu0 }
0x1092   :  { %v1868_v25 = vmul.f32 0.25, %v1786_v24  ;;  %v2643_v24 = vld [vmem:[%s3642_s10 + $0x20] sm:$0xff] }
0x1093   :  { %v2884_v26 = vpop.f32.mrf.mxu1  ;;  %v2889_v27 = vpop.f32.mrf.mxu0 }
0x1094   :  { %v1870_v28 = vadd.f32 %v3255_v43, %v1868_v25 }
0x1095   :  { %v1864_v29 = vpop.f32.mrf.mxu1 }
0x1096   :  { %v1869_v30 = vmul.f32 0.25, %v1864_v29  ;;  %v1872_v32 = vsel %vm376_vm3, %v1870_v28, -inf }
0x1097   :  { %1873 = vmax.xlane.f32.xlu0 %v1872_v32  ;;  %v2894_v35 = vpop.f32.mrf.mxu1 }
0x1098   :  { %v1871_v36 = vadd.f32 %v3261_v48, %v1869_v30  ;;  %v2641_v35 = vld [vmem:[%s3640_s8 + $0x1] ss:$0 sm:$0xff] }
0x109a   :  { %v1875_v38 = vsel %vm376_vm3, %v1871_v36, -inf }
0x109b   :  { %1876 = vmax.xlane.f32.xlu1 %v1875_v38  ;;  %v2642_v38 = vld [vmem:[%s3641_s9 + $0x1] ss:$0 sm:$0xff] }
0x10ac   :  { %1970 = vrot.lane.b32.xlu1 %v3435_v39, %s3081_s0 }
0x1120   :  { %v1874_v40 = vpop.xlane.xlu0 %1873 }
0x1121   :  { %v1878_v41 = vsub.f32 %v1870_v28, %v1874_v40 }
0x1123   :  { %v1880_v37 = vmul.f32 1.442695, %v1878_v41 }
0x1124   :  { %v1877_v42 = vpop.xlane.xlu1 %1876 }
0x1125   :  { %3009 = vpow2.f32 %v1880_v37  ;;  %v1879_v43 = vsub.f32 %v1871_v36, %v1877_v42 }
0x1127   :  { %v1882_v44 = vmul.f32 1.442695, %v1879_v43 }
0x1128   :  { %v1971_v45 = vpop.permute.xlu1 %1970 }
0x1129   :  { %3011 = vpow2.f32 %v1882_v44  ;;  %2901 = vmatpush3.msra.mxu1 %v1971_v45  ;;  %v2658_v45 = vld [vmem:[%s3644_s12 + $0x78] sm:$0xff] }
0x1132   :  { %v3010_v49 = vpop.eup %3009 }
0x1133   :  { %v1884_v50 = vsel %vm376_vm3, %v3010_v49, 0.0 }
0x1134   :  { %1885 = vadd.xlane.f32.xlu0 %v1884_v50  ;;  %v2656_v50 = vld [vmem:[%s3644_s12 + $0x68] sm:$0xff] }
0x1136   :  { %v3012_v48 = vpop.eup %3011 }
0x1137   :  { %v1887_v51 = vsel %vm376_vm3, %v3012_v48, 0.0 }
0x1138   :  { %1888 = vadd.xlane.f32.xlu0 %v1887_v51  ;;  %v2654_v51 = vld [vmem:[%s3644_s12 + $0x58] sm:$0xff] }
0x114e   :  { %1894 = vrot.lane.b32.xlu0 %v3437_v52, %s3081_s0  ;;  %v2633_v52 = vld [vmem:[%s3638_s6 + $0x30] sm:$0xff] }
0x11bd   :  { %v1886_v39 = vpop.xlane.xlu0 %1885 }
0x11be   :  { %3013 = vrcp.f32 %v1886_v39  ;;  %v2653_v39 = vld [vmem:[%s3644_s12 + $0x50] sm:$0xff] }
0x11c1   :  { %v1889_v53 = vpop.xlane.xlu0 %1888 }
0x11c2   :  { %3015 = vrcp.f32 %v1889_v53  ;;  %v2652_v53 = vld [vmem:[%s3644_s12 + $0x48] sm:$0xff] }
0x11c5   :  { %v1895_v54 = vpop.permute.xlu0 %1894 }
0x11c6   :  { %2896 = vmatpush3.msra.mxu0 %v1895_v54  ;;  %v2651_v54 = vld [vmem:[%s3644_s12 + $0x40] sm:$0xff] }
0x11c7   :  { %2905 = vmatprep.subr.mxu0 %v2634_v59 }
0x11cb   :  { %v3014_v55 = vpop.eup %3013 }
0x11cc   :  { %v1892_v56 = vmul.f32 %v3014_v55, %v3010_v49  ;;  %v2657_v49 = vld [vmem:[%s3644_s12 + $0x70] sm:$0xff]  ;;  %v2648_v55 = vld [vmem:[%s3643_s11 + $0x1] ss:$0 sm:$0xff] }
0x11ce   :  { %2898 = vmatmul.mubr.msk.f32.vlgmr.msra.gmra.mxu0 %vm376_vm3, %v1892_v56 }
0x11cf   :  { %v3016_v57 = vpop.eup %3015  ;;  %2906 = vmatpush3.msra.mxu0 %v2634_v59 }
0x11d0   :  { %v1893_v58 = vmul.f32 %v3016_v57, %v3012_v48  ;;  %2907 = vmatprep.subr.mxu0 %v2633_v52  ;;  %v2655_v48 = vld [vmem:[%s3644_s12 + $0x60] sm:$0xff] }
0x11d1   :  { %2908 = vmatpush3.msra.mxu0 %v2633_v52 }
0x11d2   :  { %2903 = vmatmul.mubr.msk.f32.vlgmr.msra.gmra.mxu1 %vm376_vm3, %v1893_v58  ;;  %2909 = vmatprep.subr.mxu0 %v2632_v60 }
0x11d3   :  { %2910 = vmatpush3.msra.mxu0 %v2632_v60 }
0x11d4   :  { %2911 = vmatprep.subr.mxu0 %v2631_v61 }
0x11d5   :  { %2912 = vmatpush3.msra.mxu0 %v2631_v61 }
0x11d6   :  { %2927 = vmatprep.subr.mxu0 %v2658_v45 }
0x128e   :  { %v1966_v62 = vpop.f32.mrf.mxu0 }
0x128f   :  { %2048 = vrot.lane.b32.xlu1 %v1966_v62, %s3082_s3 }
0x1290   :  { %v2899_v63 = vpop.f32.mrf.mxu0 }
0x1292   :  { %v2042_v0 = vpop.f32.mrf.mxu1 }
0x1293   :  { %2050 = vrot.lane.b32.xlu1 %v2042_v0, %s3082_s3 }
0x1294   :  { %v2904_v1 = vpop.f32.mrf.mxu1 }
0x1301   :  { %v2049_v2 = vpop.permute.xlu1 %2048 }
0x1302   :  { %v2054_v3 = vsel %vm208_vm2, %v3491_v21, %v2049_v2 }
0x1303   :  { %2913 = vmatprep.mubr.msk.f32.mxu0 %vm69_vm0, %v2054_v3 }
0x1305   :  { %v2051_v4 = vpop.permute.xlu1 %2050 }
0x1306   :  { %v2055_v5 = vsel %vm208_vm2, %v3493_v23, %v2051_v4  ;;  %v2644_v23 = vld [vmem:[%s3642_s10 + $0x28] sm:$0xff] }
0x1307   :  { %2914 = vmatmul.mubr.msk.f32.vlgmr.msra.gmra.mxu0 %vm69_vm0, %v2055_v5 }
0x1308   :  { %2928 = vmatpush3.msra.mxu0 %v2658_v45 }
0x1309   :  { %2929 = vmatprep.subr.mxu0 %v2657_v49 }
0x130a   :  { %2930 = vmatpush3.msra.mxu0 %v2657_v49 }
0x130b   :  { %2931 = vmatprep.subr.mxu0 %v2656_v50 }
0x130c   :  { %2932 = vmatpush3.msra.mxu0 %v2656_v50 }
0x130d   :  { %2933 = vmatprep.subr.mxu0 %v2655_v48 }
0x130e   :  { %2934 = vmatpush3.msra.mxu0 %v2655_v48 }
0x130f   :  { %2935 = vmatprep.subr.mxu0 %v2654_v51 }
0x1310   :  { %2936 = vmatpush3.msra.mxu0 %v2654_v51 }
0x1311   :  { %2937 = vmatprep.subr.mxu0 %v2653_v39 }
0x1312   :  { %2938 = vmatpush3.msra.mxu0 %v2653_v39 }
0x1313   :  { %2939 = vmatprep.subr.mxu0 %v2652_v53 }
0x1314   :  { %2940 = vmatpush3.msra.mxu0 %v2652_v53 }
0x1315   :  { %2941 = vmatprep.subr.mxu0 %v2651_v54 }
0x1316   :  { %2942 = vmatpush3.msra.mxu0 %v2651_v54 }
0x13c7   :  { %v2915_v7 = vpop.f32.mrf.mxu0 }
0x13c8   :  { %v2147_v8 = vadd.f32 %v2915_v7, %v2636_v6 }
0x13c9   :  { %v2141_v9 = vpop.f32.mrf.mxu0 }
0x13ca   :  { %v2142_v10 = vadd.f32 %v2636_v6, %v2141_v9  ;;  %v2151_v11 = vadd.f32 %v2147_v8, %v3424_v47 }
0x13cc   :  { %v2159_v12 = vsel %vm69_vm0, %v2151_v11, 0.0  ;;  %v2150_v13 = vadd.f32 %v2142_v10, %v3422_v46  ;;  %v2646_v46 = vld [vmem:[%s3642_s10 + $0x38] sm:$0xff] }
0x13cd   :  { %2160 = vadd.xlane.f32.xlu1 %v2159_v12  ;;  %2916 = vmatprep.subr.mxu1 %v2646_v46 }
0x13ce   :  { %v2156_v14 = vsel %vm69_vm0, %v2150_v13, 0.0  ;;  %2917 = vmatpush3.msra.mxu1 %v2646_v46 }
0x13cf   :  { %2157 = vadd.xlane.f32.xlu0 %v2156_v14  ;;  %2918 = vmatprep.subr.mxu1 %v2645_v22 }
0x13d0   :  { %2919 = vmatpush3.msra.mxu1 %v2645_v22 }
0x13d1   :  { %2920 = vmatprep.subr.mxu1 %v2644_v23 }
0x13d2   :  { %2921 = vmatpush3.msra.mxu1 %v2644_v23 }
0x13d3   :  { %2922 = vmatprep.subr.mxu1 %v2643_v24 }
0x13d4   :  { %2923 = vmatpush3.msra.mxu1 %v2643_v24 }
0x13d5   :  { %2946 = vmatprep.subr.mxu1 %v3075_v34 }
0x1456   :  { %v2161_v33 = vpop.xlane.xlu1 %2160 }
0x1457   :  { %v2163_v31 = vmul.f32 0.03125, %v2161_v33 }
0x1458   :  { %v2158_v15 = vpop.xlane.xlu0 %2157 }
0x1459   :  { %v2162_v16 = vmul.f32 0.03125, %v2158_v15  ;;  %v2165_v17 = vsub.f32 %v2151_v11, %v2163_v31 }
0x145b   :  { %v2164_v18 = vsub.f32 %v2150_v13, %v2162_v16  ;;  %v2167_v21 = vmul.f32 %v2165_v17, %v2165_v17  ;;  %v2660_v13 = vld [vmem:[%s3645_s13 + $0x1] ss:$0 sm:$0xff] }
0x145d   :  { %v2166_v19 = vmul.f32 %v2164_v18, %v2164_v18  ;;  %v2171_v47 = vsel %vm69_vm0, %v2167_v21, 0.0 }
0x145f   :  { %v2168_v20 = vsel %vm69_vm0, %v2166_v19, 0.0 }
0x1460   :  { %2169 = vadd.xlane.f32.xlu0 %v2168_v20 }
0x1464   :  { %2172 = vadd.xlane.f32.xlu0 %v2171_v47 }
0x14e9   :  { %v2170_v25 = vpop.xlane.xlu0 %2169 }
0x14ea   :  { %v2174_v26 = vmul.f32 0.03125, %v2170_v25 }
0x14ec   :  { %v2176_v27 = vadd.f32 1e-05, %v2174_v26 }
0x14ed   :  { %v2173_v28 = vpop.xlane.xlu0 %2172 }
0x14ee   :  { %3017 = vrsqrt.f32 %v2176_v27  ;;  %v2175_v29 = vmul.f32 0.03125, %v2173_v28  ;;  %v2461_v28 = vld [vmem:[%s3648_s16 + $0x18] sm:$0xff] }
0x14f0   :  { %v2177_v30 = vadd.f32 1e-05, %v2175_v29  ;;  %v2460_v29 = vld [vmem:[%s3648_s16 + $0x10] sm:$0xff] }
0x14f2   :  { %3019 = vrsqrt.f32 %v2177_v30  ;;  %v2459_v30 = vld [vmem:[%s3648_s16 + $0x8] sm:$0xff] }
0x14fb   :  { %v3018_v32 = vpop.eup %3017 }
0x14fc   :  { %v2180_v36 = vmul.f32 %v3018_v32, %v2164_v18  ;;  %v2458_v32 = vld [vmem:[%s3648_s16] sm:$0xff] }
0x14fe   :  { %v2188_v40 = vmul.f32 %v2641_v35, %v2180_v36 }
0x14ff   :  { %v3020_v41 = vpop.eup %3019 }
0x1500   :  { %v2181_v37 = vmul.f32 %v3020_v41, %v2165_v17  ;;  %v3555_v42 = vadd.f32 %v2642_v38, %v2188_v40 }
0x1502   :  { %v2189_v43 = vmul.f32 %v2641_v35, %v2181_v37  ;;  %2924 = vmatprep.mubr.msk.f32.mxu1 %vm69_vm0, %v3555_v42 }
0x1504   :  { %v2197_v44 = vadd.f32 %v2642_v38, %v2189_v43  ;;  %v2665_v43 = vld [vmem:[%s3646_s14 + $0x1] ss:$0 sm:$0xff]  ;;  %s3083_s14 = smov [#allocation2]  }
0x1505   :  { %s2554_s20 = sshll.u32 %s3083_s14, 4  ;;  %s2555_s20 = int_to_ptr.vmem [resolvable:$true] %s2554_s20 }
0x1506   :  { %2925 = vmatmul.mubr.msk.f32.vlgmr.msra.gmra.mxu1 %vm69_vm0, %v2197_v44  ;;  %s3031_s21 = scalar_lea.vmem %s2555_s20, 256  ;;  %p3036_p1 = scmp.lt.s32.totalorder %s2555_s20, %s2555_s20 }
0x1507   :  { %2954 = vmatprep.mubr.msk.f32.mxu1 %vm3076_vm1, %v3075_v34  ;;  %2947 = vmatpush3.msra.mxu1 %v2461_v28  ;;  %p3032_p0 = scmp.ne.s32.totalorder %s2555_s20, %s3031_s21  ;;  %p3037_p2 = scmp.lt.s32.totalorder %s3031_s21, %s3031_s21 }
0x1508   :  { %2948 = vmatprep.subr.mxu1 %v3075_v34 }
0x1509   :  { %2949 = vmatpush3.msra.mxu1 %v2460_v29  ;;  %p3038_p3 = por %p3037_p2, %p3036_p1 }
0x150a   :  { %2950 = vmatprep.subr.mxu1 %v3075_v34 }
0x150b   :  { %2951 = vmatpush3.msra.mxu1 %v2459_v30  ;;  %p3039_p4 = pnand %p3038_p3, %p3032_p0 }
0x150c   :  { %2952 = vmatprep.subr.mxu1 %v3075_v34  ;;  %v2666_v34 = vld [vmem:[%s3647_s15 + $0x1] ss:$0 sm:$0xff] }
0x150d   :  { %2953 = vmatpush3.msra.mxu1 %v2458_v32 }
0x15c6   :  { %v2926_v56 = vpop.f32.mrf.mxu1 }
0x15c7   :  { %v2289_v57 = vadd.f32 %v2926_v56, %v2648_v55 }
0x15c8   :  { %v2283_v58 = vpop.f32.mrf.mxu1 }
0x15c9   :  { %v2293_v59 = vmul.f32 %v2289_v57, %v2289_v57  ;;  %v2284_v52 = vadd.f32 %v2648_v55, %v2283_v58 }
0x15cb   :  { %v2295_v60 = vmul.f32 %v2293_v59, %v2289_v57  ;;  %v2292_v61 = vmul.f32 %v2284_v52, %v2284_v52 }
0x15cd   :  { %v2297_v62 = vmul.f32 0.044715, %v2295_v60  ;;  %v2294_v63 = vmul.f32 %v2292_v61, %v2284_v52 }
0x15cf   :  { %v2299_v0 = vadd.f32 %v2297_v62, %v2289_v57  ;;  %v2296_v1 = vmul.f32 0.044715, %v2294_v63 }
0x15d1   :  { %v2301_v2 = vmul.f32 0.7978846, %v2299_v0  ;;  %v2298_v3 = vadd.f32 %v2296_v1, %v2284_v52 }
0x15d3   :  { %3021 = vtanh.f32 %v2301_v2  ;;  %v2300_v4 = vmul.f32 0.7978846, %v2298_v3 }
0x15d5   :  { %3023 = vtanh.f32 %v2300_v4 }
0x15e0   :  { %v3022_v5 = vpop.eup %3021 }
0x15e1   :  { %v2305_v6 = vadd.f32 1.0, %v3022_v5 }
0x15e2   :  { %v3024_v7 = vpop.eup %3023 }
0x15e3   :  { %v2304_v8 = vadd.f32 1.0, %v3024_v7  ;;  %v2307_v9 = vmul.f32 0.5, %v2305_v6 }
0x15e5   :  { %v2306_v10 = vmul.f32 0.5, %v2304_v8  ;;  %v2309_v12 = vmul.f32 %v2307_v9, %v2289_v57 }
0x15e7   :  { %v2308_v11 = vmul.f32 %v2306_v10, %v2284_v52 }
0x15e9   :  { %2943 = vmatprep.mubr.msk.f32.mxu0 %vm1158_vm4, %v2308_v11 }
0x15ea   :  { %2944 = vmatmul.mubr.msk.f32.vlgmr.msra.gmra.mxu0 %vm1158_vm4, %v2309_v12 }
0x16aa   :  { %v2945_v14 = vpop.f32.mrf.mxu0 }
0x16ab   :  { %v2405_v33 = vadd.f32 %v2945_v14, %v2660_v13 }
0x16ac   :  { %v2399_v31 = vpop.f32.mrf.mxu0 }
0x16ad   :  { %v2400_v15 = vadd.f32 %v2660_v13, %v2399_v31  ;;  %v2409_v16 = vadd.f32 %v2405_v33, %v2197_v44 }
0x16af   :  { %v2417_v17 = vsel %vm69_vm0, %v2409_v16, 0.0  ;;  %v2408_v18 = vadd.f32 %v2400_v15, %v3555_v42 }
0x16b0   :  { %2418 = vadd.xlane.f32.xlu0 %v2417_v17 }
0x16b1   :  { %v2414_v19 = vsel %vm69_vm0, %v2408_v18, 0.0 }
0x16b2   :  { %2415 = vadd.xlane.f32.xlu1 %v2414_v19 }
0x1739   :  { %v2419_v20 = vpop.xlane.xlu0 %2418 }
0x173a   :  { %v2421_v21 = vmul.f32 0.03125, %v2419_v20 }
0x173b   :  { %v2416_v47 = vpop.xlane.xlu1 %2415 }
0x173c   :  { %v2423_v46 = vsub.f32 %v2409_v16, %v2421_v21  ;;  %v2420_v22 = vmul.f32 0.03125, %v2416_v47 }
0x173e   :  { %v2422_v23 = vsub.f32 %v2408_v18, %v2420_v22  ;;  %v2425_v24 = vmul.f32 %v2423_v46, %v2423_v46 }
0x1740   :  { %v2429_v25 = vsel %vm69_vm0, %v2425_v24, 0.0  ;;  %v2424_v26 = vmul.f32 %v2422_v23, %v2422_v23 }
0x1741   :  { %2430 = vadd.xlane.f32.xlu0 %v2429_v25 }
0x1742   :  { %v2426_v27 = vsel %vm69_vm0, %v2424_v26, 0.0 }
0x1743   :  { %2427 = vadd.xlane.f32.xlu1 %v2426_v27 }
0x17ca   :  { %v2431_v35 = vpop.xlane.xlu0 %2430 }
0x17cb   :  { %v2433_v36 = vmul.f32 0.03125, %v2431_v35 }
0x17cc   :  { %v2428_v38 = vpop.xlane.xlu1 %2427 }
0x17cd   :  { %v2435_v40 = vadd.f32 1e-05, %v2433_v36  ;;  %v2432_v41 = vmul.f32 0.03125, %v2428_v38 }
0x17cf   :  { %3025 = vrsqrt.f32 %v2435_v40  ;;  %v2434_v37 = vadd.f32 1e-05, %v2432_v41 }
0x17d1   :  { %3027 = vrsqrt.f32 %v2434_v37 }
0x17dc   :  { %v3026_v42 = vpop.eup %3025 }
0x17dd   :  { %v2439_v44 = vmul.f32 %v3026_v42, %v2423_v46 }
0x17de   :  { %v3028_v45 = vpop.eup %3027 }
0x17df   :  { %v2438_v49 = vmul.f32 %v3028_v45, %v2422_v23  ;;  %v2447_v50 = vmul.f32 %v2665_v43, %v2439_v44 }
0x17e1   :  { %v2446_v48 = vmul.f32 %v2665_v43, %v2438_v49  ;;  %v2455_v51 = vadd.f32 %v2666_v34, %v2447_v50 }
0x17e3   :  { %v2454_v39 = vadd.f32 %v2666_v34, %v2446_v48  ;;  %v2471_v53 = vrot.slane %v2455_v51, 7  ;;  %2457 = vst.msk [vmem:[#allocation2 + $0x8] sm:$0xff] %vm69_vm0, %v2455_v51 }
0x17e5   :  { %v2473_v54 = vsel %vm2472_vm5, %v2471_v53, %v2454_v39  ;;  %2456 = vst.msk [vmem:[#allocation2] sm:$0xff] %vm69_vm0, %v2454_v39 }
0x17e6   :  { %2955 = vmatmul.mubr.msk.f32.vlgmr.msra.gmra.mxu1 %vm69_vm0, %v2473_v54 }
0x17e7   :  { %3042 = shalt.err (!%p3039_p4)
}
0x17e8   :  { %s3084_s15 = smov 128   ;;  %s3085_s6 = smov 8   ;;  %v2667_v55 = vld [vmem:[%s3649_s17] ss:$0 sm:$0xff]  ;;  %vm2547_vm6 = vcmask 254976  }
0x17e9   :  { %2560 = dma.vmem_to_hbm [thread:$0]  %s2555_s20, 256, %s3650_s18, [#allocation3], %s3084_s15, %s3084_s15, %s3085_s6  }
0x17ea   :  { %s3086_s23 = smov [#allocation4]  }
0x17eb   :  { %s2567_s24 = sshll.u32 %s3086_s23, 4  ;;  %s2568_s24 = int_to_ptr.vmem [resolvable:$true] %s2567_s24 }
0x17ec   :  { %s3051_s4 = scalar_lea.vmem %s2568_s24, 32  ;;  %p3056_p6 = scmp.lt.s32.totalorder %s2568_s24, %s2568_s24 }
0x17ed   :  { %p3052_p5 = scmp.ne.s32.totalorder %s2568_s24, %s3051_s4  ;;  %p3057_p7 = scmp.lt.s32.totalorder %s3051_s4, %s3051_s4 }
0x17ef   :  { %p3058_p8 = por %p3057_p7, %p3056_p6 }
0x17f1   :  { %p3059_p9 = pnand %p3058_p8, %p3052_p5 }
0x18a6   :  { %v2542_v56 = vpop.f32.mrf.mxu1 }
0x18a7   :  { %v2543_v57 = vadd.f32 %v2667_v55, %v2542_v56 }
0x18a8   :  { %v2956_v58 = vpop.f32.mrf.mxu1 }
0x18a9   :  { %3029 = vtanh.f32 %v2543_v57 }
0x18b6   :  { %v3030_v59 = vpop.eup %3029 }
0x18b7   :  { %2548 = vst.msk [vmem:[#allocation4] sm:$0x3] %vm2547_vm6, %v3030_v59 }
0x18b8   :  { %3062 = shalt.err (!%p3059_p9)
}
0x18b9   :  { %2570 = dma.vmem_to_hbm [thread:$0]  %s2568_s24, 32, %s3651_s19, [#allocation5]  }
0x18ba   :  { %3071 = dma.done.wait [#allocation3], 256  }
0x18bb   :  { %3072 = vsyncadd [#allocation3], 4294967040 }
0x18bc   :  { %3073 = dma.done.wait [#allocation5], 32  }
0x18bd   :  { %3074 = vsyncadd [#allocation5], 4294967264 }
0x18be   :  { %2577 = vsyncpa [#allocation3], 1 }
0x18bf   :  { %2578 = vsyncpa [#allocation5], 1 }

</bundles_post_ra>
